<compile_context>
chip_gen: v6e
topology: v6e:2x2x1
jax: 0.10.0
libtpu: 0.0.40
codegen_flags: <defaults>
</compile_context>

<pallas_src>
import functools
import math

import jax
import jax.numpy as jnp
from jax import lax
from jax.experimental import pallas as pl
from jax.experimental.pallas import tpu as pltpu


def _round_up(v, m):
    return (v + m - 1) // m * m


def _tpu_vmem_bytes():
    """Per-core VMEM capacity; conservative 64 MiB (v7x) fallback if the query fails."""
    try:
        return int(pltpu.get_tpu_info().vmem_capacity_bytes)
    except Exception:
        return 64 * 1024 * 1024


@functools.cache
def _weights_pipeline_mode():
    """pl.Buffered(1) if single-buffered resident blocks compile on this JAX/TPU, else None.

    Single-buffering the grid-constant weight blocks halves their VMEM footprint (matters
    most on v7x's 64 MiB VMEM). Probed once with a tiny kernel so unsupported runtimes
    silently fall back to default double buffering instead of failing to compile.
    """
    try:
        mode = pl.Buffered(1)

        def _probe(x_ref, o_ref):
            o_ref[...] = x_ref[...]

        fn = pl.pallas_call(
            _probe,
            out_shape=jax.ShapeDtypeStruct((8, 128), jnp.float32),
            grid=(1,),
            in_specs=[pl.BlockSpec((8, 128), lambda i: (0, 0), pipeline_mode=mode)],
            out_specs=pl.BlockSpec((8, 128), lambda i: (0, 0)))
        jax.block_until_ready(jax.jit(fn)(jnp.zeros((8, 128), jnp.float32)))
        return mode
    except Exception:
        return None


def _gru_disc_kernel(len_ref, x_ref, wih_ref, whh_rz_ref, whh_n_ref, bx_ref, bhn_ref,
                     wfc_ref, bfc_ref, logits_ref, yhat_ref, h_ref, xw_ref):
    # len_ref:    (BB, 1)     int32 sequence lengths (padded batch rows are 0)
    # x_ref:      (TT, BB, D) time-major input block (streamed over the time grid axis)
    # wih_ref:    (D, 3*Hp)   fused input->hidden weights, gate order [r | z | n]
    # whh_rz_ref: (Hp, 2*Hp)  hidden->hidden weights for the r|z gates
    # whh_n_ref:  (Hp, Hp)    hidden->hidden weights for the n gate
    # bx_ref:     (1, 3*Hp)   [b_ir+b_hr | b_iz+b_hz | b_in]  (folded into input projection)
    # bhn_ref:    (1, Hp)     b_hn (must stay inside r * (...))
    # wfc_ref:    (Hp, 1), bfc_ref: (1, 1)
    # h_ref:      (BB, Hp)    persistent hidden-state scratch (lives across time blocks)
    # xw_ref:     (TT*BB, 3*Hp) staged input projections for this time block (f32)
    TT, BB, D = x_ref.shape
    Hp = whh_n_ref.shape[0]
    mxu_dtype = whh_n_ref.dtype
    t_blk = pl.program_id(1)

    @pl.when(t_blk == 0)
    def _init():
        h_ref[...] = jnp.zeros_like(h_ref)

    # Hoisted input projection: ONE (TT*BB, D) x (D, 3*Hp) MXU matmul per time block,
    # biases that always combine already folded in; staged/accumulated in f32.
    x_flat = x_ref[...].reshape(TT * BB, D)
    xw_ref[...] = (jnp.dot(x_flat, wih_ref[...], preferred_element_type=jnp.float32)
                   + bx_ref[...])

    w_rz = whh_rz_ref[...]
    w_n = whh_n_ref[...]
    b_hn = bhn_ref[...]
    # Hoist the (BB,1) -> (BB,Hp) lane broadcast out of the serial loop.
    lens = jnp.broadcast_to(len_ref[...], (BB, Hp))
    t0 = t_blk * TT

    def step(t, h):
        row = pl.multiple_of(t * BB, 8)
        gx = xw_ref[pl.ds(row, BB), :]                                    # (BB, 3*Hp) f32
        h_mx = h.astype(mxu_dtype)                                        # MXU-input cast only
        # r|z slab first so the two sigmoids (EUP) overlap the n-slab MXU pass.
        gh_rz = jnp.dot(h_mx, w_rz, preferred_element_type=jnp.float32)  # (BB, 2*Hp)
        r = jax.nn.sigmoid(gx[:, :Hp] + gh_rz[:, :Hp])
        z = jax.nn.sigmoid(gx[:, Hp:2 * Hp] + gh_rz[:, Hp:])
        gh_n = jnp.dot(h_mx, w_n, preferred_element_type=jnp.float32)    # (BB, Hp)
        n = jnp.tanh(gx[:, 2 * Hp:] + r * (gh_n + b_hn))
        h_new = (1.0 - z) * n + z * h
        # Packed-sequence semantics: freeze h once t >= seq_lengths[b] (single vsel).
        return jnp.where(t0 + t < lens, h_new, h)

    # Big batch blocks: unroll=2 keeps the live set (h, gx, gh, r/z/n) under 64 vregs.
    unroll = 2 if BB >= 64 else min(TT, 8)
    h_last = lax.fori_loop(0, TT, step, h_ref[...], unroll=unroll)
    h_ref[...] = h_last

    @pl.when(t_blk == pl.num_programs(1) - 1)
    def _finalize():
        logits = (jnp.dot(h_last, wfc_ref[...], preferred_element_type=jnp.float32)
                  + bfc_ref[...])
        logits_ref[...] = logits
        yhat_ref[...] = jax.nn.sigmoid(logits)


def _pack_params(params, Hp, mxu_dtype):
    """Fuse per-gate weights, split W_hh into r|z and n slabs, fold biases, pad H -> Hp.

    Padded hidden columns keep pre-activations exactly 0 (r=z=0.5, n=0) so padded h stays 0;
    padded W_hh / W_fc rows are 0 so valid outputs are unaffected by the padding.
    """
    w_ih, w_hh = params["w_ih"], params["w_hh"]            # (3, D, H), (3, H, H)
    b_ih, b_hh = params["b_ih"], params["b_hh"]            # (3, 1, H), (3, 1, H)
    H = w_ih.shape[2]
    pad_c = lambda a: jnp.pad(a, ((0, 0), (0, Hp - H)))    # pad trailing hidden dim
    pad_rc = lambda a: jnp.pad(a, ((0, Hp - H), (0, Hp - H)))

    wih_f = jnp.concatenate([pad_c(w_ih[g]) for g in range(3)], axis=1).astype(mxu_dtype)
    whh_rz = jnp.concatenate([pad_rc(w_hh[0]), pad_rc(w_hh[1])], axis=1).astype(mxu_dtype)
    whh_n = pad_rc(w_hh[2]).astype(mxu_dtype)
    bx = jnp.concatenate([pad_c(b_ih[0] + b_hh[0]),
                          pad_c(b_ih[1] + b_hh[1]),
                          pad_c(b_ih[2])], axis=1).astype(jnp.float32)       # (1, 3Hp)
    bhn = pad_c(b_hh[2]).astype(jnp.float32)                                 # (1, Hp)
    wfc = jnp.pad(params["w_fc"], ((0, Hp - H), (0, 0))).astype(jnp.float32) # (Hp, 1)
    return wih_f, whh_rz, whh_n, bx, bhn, wfc, params["b_fc"].astype(jnp.float32)


def discriminator_forward(x, seq_lengths, params, mxu_dtype=jnp.float32):
    """x: (B, T, D) float32 batch-first; seq_lengths: (B,) int. Returns (logits, y_hat).

    mxu_dtype: dtype fed to the MXU for x / W_ih / W_hh. float32 = exact torch parity;
    bfloat16 = fast path for v6e/v7x (h carry and gate elementwise math stay float32).
    """
    B, T, D = x.shape
    H = params["w_hh"].shape[2]
    Hp = _round_up(H, 128)                          # lane-aligned hidden size

    vmem_bytes = _tpu_vmem_bytes()
    small_vmem = vmem_bytes < 100 * 1024 * 1024     # v7x: 64 MiB/TC; v5e/v6e: 128 MiB
    num_tc = 2 if small_vmem else 1                 # v7x: 2 TensorCores share the grid

    x_itemsize = jnp.dtype(mxu_dtype).itemsize
    sub = 8 if x_itemsize == 4 else 16              # sublane granule (bf16 packs 2 rows)

    # Batch block: feed the 256-row MXU during the serial recurrence; megacore guard keeps
    # at least `num_tc` batch blocks so the "parallel" axis gives every TensorCore work.
    BB = _round_up(min(max(B, sub), 256), sub)
    while num_tc > 1 and BB > sub and _round_up(B, BB) // BB < num_tc:
        BB = max(sub, _round_up(BB // 2, sub))
    Bp = _round_up(B, BB)

    # Time block sized against a per-generation VMEM budget; accounting includes the lane
    # padding of the x block (round_up(D,128)), resident-weight buffers, h scratch, outputs.
    Dp = _round_up(D, 128)
    pmode = _weights_pipeline_mode()
    w_bufs = 1 if pmode is not None else 2
    weight_bytes = w_bufs * (
        (_round_up(D, 8) * 3 * Hp + Hp * 3 * Hp) * x_itemsize          # W_ih + W_hh (rz|n)
        + (8 * 4 * Hp + _round_up(Hp, 8) * 128 + 8 * 128) * 4)         # biases + FC (padded)
    fixed_bytes = weight_bytes + BB * Hp * 4 + 6 * BB * 128 * 4        # h scratch, lens, outs
    per_t_bytes = BB * (2 * Dp * x_itemsize + 3 * Hp * 4)              # x dbl-buffer + f32 xw
    budget = (12 if small_vmem else 32) * 1024 * 1024
    TT = max(8, min(_round_up(T, 8), (budget - fixed_bytes) // per_t_bytes // 8 * 8))
    Tp = _round_up(T, TT)

    # Single fused cast + pad + relayout to time-major (one XLA pass over x).
    x_p = jnp.pad(x.astype(mxu_dtype), ((0, Bp - B), (0, Tp - T), (0, 0)))
    x_tm = jnp.transpose(x_p, (1, 0, 2))                               # (Tp, Bp, D)
    lens = jnp.pad(jnp.asarray(seq_lengths).astype(jnp.int32).reshape(B),
                   (0, Bp - B)).reshape(Bp, 1)

    wih_f, whh_rz, whh_n, bx, bhn, wfc, bfc = _pack_params(params, Hp, mxu_dtype)

    def _wspec(shape):
        # Grid-constant resident blocks; single-buffered when the runtime supports it.
        if pmode is not None:
            return pl.BlockSpec(shape, lambda b, t: (0, 0), pipeline_mode=pmode)
        return pl.BlockSpec(shape, lambda b, t: (0, 0))

    grid = (Bp // BB, Tp // TT)
    flops = 2 * Tp * Bp * 3 * Hp * (D + Hp) + 2 * Bp * Hp
    bytes_accessed = (x_itemsize * (Tp * Bp * D + (D + Hp) * 3 * Hp)
                      + 4 * (5 * Hp + 3 * Bp + 1))

    grid_spec = pltpu.PrefetchScalarGridSpec(
        num_scalar_prefetch=0,
        grid=grid,
        in_specs=[
            pl.BlockSpec((BB, 1), lambda b, t: (b, 0)),            # seq lengths
            pl.BlockSpec((TT, BB, D), lambda b, t: (t, b, 0)),     # x, streamed over time
            _wspec((D, 3 * Hp)),                                   # fused W_ih   (resident)
            _wspec((Hp, 2 * Hp)),                                  # W_hh[r|z]    (resident)
            _wspec((Hp, Hp)),                                      # W_hh[n]      (resident)
            _wspec((1, 3 * Hp)),                                   # fused input bias
            _wspec((1, Hp)),                                       # b_hn
            _wspec((Hp, 1)),                                       # W_fc
            _wspec((1, 1)),                                        # b_fc
        ],
        out_specs=(
            pl.BlockSpec((BB, 1), lambda b, t: (b, 0)),            # logits
            pl.BlockSpec((BB, 1), lambda b, t: (b, 0)),            # y_hat
        ),
        scratch_shapes=[
            pltpu.VMEM((BB, Hp), jnp.float32),                     # persistent hidden state
            pltpu.VMEM((TT * BB, 3 * Hp), jnp.float32),            # staged input projections
        ],
    )

    logits, y_hat = pl.pallas_call(
        _gru_disc_kernel,
        out_shape=(jax.ShapeDtypeStruct((Bp, 1), jnp.float32),
                   jax.ShapeDtypeStruct((Bp, 1), jnp.float32)),
        grid_spec=grid_spec,
        compiler_params=pltpu.CompilerParams(
            dimension_semantics=("parallel", "arbitrary"),
            vmem_limit_bytes=(48 if small_vmem else 96) * 1024 * 1024),
        cost_estimate=pl.CostEstimate(
            flops=flops,
            transcendentals=3 * Tp * Bp * Hp + Bp,
            bytes_accessed=bytes_accessed),
    )(lens, x_tm, wih_f, whh_rz, whh_n, bx, bhn, wfc, bfc)

    return logits[:B], y_hat[:B]


def _reference_forward(x, seq_lengths, params):
    """Pure-JAX reference matching torch GRU + packed-sequence semantics (f32, per-gate)."""
    B, T, D = x.shape
    H = params["w_hh"].shape[2]
    h = jnp.zeros((B, H), jnp.float32)
    lens = jnp.asarray(seq_lengths).astype(jnp.int32).reshape(B, 1)
    for t in range(T):
        x_t = x[:, t, :]
        r = jax.nn.sigmoid(x_t @ params["w_ih"][0] + params["b_ih"][0]
                           + h @ params["w_hh"][0] + params["b_hh"][0])
        z = jax.nn.sigmoid(x_t @ params["w_ih"][1] + params["b_ih"][1]
                           + h @ params["w_hh"][1] + params["b_hh"][1])
        n = jnp.tanh(x_t @ params["w_ih"][2] + params["b_ih"][2]
                     + r * (h @ params["w_hh"][2] + params["b_hh"][2]))
        h_new = (1.0 - z) * n + z * h
        valid = (t < lens).astype(jnp.float32)
        h = valid * h_new + (1.0 - valid) * h
    logits = h @ params["w_fc"] + params["b_fc"]
    return logits, jax.nn.sigmoid(logits)


def init_params(key, input_dim, hidden_dim):
    """Deterministic init mirroring nn.GRU / nn.Linear (uniform(-1/sqrt(H), 1/sqrt(H)))."""
    ks = jax.random.split(key, 6)
    s = 1.0 / math.sqrt(hidden_dim)
    u = lambda k, shape: jax.random.uniform(k, shape, jnp.float32, -s, s)
    return dict(
        w_ih=u(ks[0], (3, input_dim, hidden_dim)),   # gates (r, z, n), transposed vs torch
        w_hh=u(ks[1], (3, hidden_dim, hidden_dim)),
        b_ih=u(ks[2], (3, 1, hidden_dim)),
        b_hh=u(ks[3], (3, 1, hidden_dim)),
        w_fc=u(ks[4], (hidden_dim, 1)),
        b_fc=u(ks[5], (1, 1)),
    )


if __name__ == "__main__":
    B, T, D, H = 4, 8, 4, 32  # batch, seq len, input_dim, hidden_dim
    key = jax.random.PRNGKey(0)
    kp, kx = jax.random.split(key)
    params = init_params(kp, D, H)
    x = jax.random.normal(kx, (B, T, D), jnp.float32)
    seq_lengths = jnp.array([8, 5, 3, 8], dtype=jnp.int32)

    _weights_pipeline_mode()  # prime the (cached) single-buffer capability probe

    fwd = jax.jit(discriminator_forward, static_argnames=("mxu_dtype",))
    logits, y_hat = fwd(x, seq_lengths, params)
    jax.block_until_ready((logits, y_hat))

    ref_logits, ref_yhat = _reference_forward(x, seq_lengths, params)
    assert logits.shape == (B, 1) and y_hat.shape == (B, 1)
    assert jnp.allclose(logits, ref_logits, atol=1e-4, rtol=1e-4), "logits mismatch vs reference"
    assert jnp.allclose(y_hat, ref_yhat, atol=1e-4, rtol=1e-4), "y_hat mismatch vs reference"

    # bf16 MXU-input fast path (v6e/v7x): validate against the f32 result at a loose tol.
    logits_bf, yhat_bf = fwd(x, seq_lengths, params, mxu_dtype=jnp.bfloat16)
    jax.block_until_ready((logits_bf, yhat_bf))
    assert jnp.allclose(logits_bf, logits, atol=5e-2, rtol=5e-2), "bf16 logits drifted"
    assert jnp.allclose(yhat_bf, y_hat, atol=5e-2, rtol=5e-2), "bf16 y_hat drifted"

    print("KERNEL_OK")
</pallas_src>

<mosaic_0001>
module attributes {stable_mosaic.version = 11 : i64} {
  func.func @_probe(%arg0: i32, %arg1: memref<8x128xf32, #tpu.memory_space<vmem>>, %arg2: memref<8x128xf32, #tpu.memory_space<vmem>>) attributes {dimension_semantics = [#tpu.dimension_semantics<arbitrary>], iteration_bounds = array<i64: 1>, scalar_prefetch = 0 : i64, scratch_operands = 0 : i64, tpu.core_type = #tpu.core_type<tc>, window_params = [{pipeline_mode = #tpu.pipeline_mode<synchronous>, transform_indices = @transform_0, window_bounds = array<i64: 8, 128>}, {pipeline_mode = #tpu.pipeline_mode<synchronous>, transform_indices = @transform_1, window_bounds = array<i64: 8, 128>}]} {
    %c0 = arith.constant 0 : index
    %c0_0 = arith.constant 0 : index
    %0 = vector.load %arg1[%c0, %c0_0] : memref<8x128xf32, #tpu.memory_space<vmem>>, vector<8x128xf32>
    %c0_1 = arith.constant 0 : index
    %c0_2 = arith.constant 0 : index
    %1 = vector.load %arg2[%c0_1, %c0_2] : memref<8x128xf32, #tpu.memory_space<vmem>>, vector<8x128xf32>
    tpu.vector_store %arg2[%c0_1, %c0_2], %0 {strides = array<i32>} : memref<8x128xf32, #tpu.memory_space<vmem>>, vector<8x128xf32>,
    return
  }
  func.func @transform_0(%arg0: i32) -> (i32, i32) {
    %c0_i32 = arith.constant 0 : i32
    %c0_i32_0 = arith.constant 0 : i32
    %c0_i32_1 = arith.constant 0 : i32
    return %c0_i32, %c0_i32_0 : i32, i32
  }
  func.func @transform_1(%arg0: i32) -> (i32, i32) {
    %c0_i32 = arith.constant 0 : i32
    %c0_i32_0 = arith.constant 0 : i32
    %c0_i32_1 = arith.constant 0 : i32
    return %c0_i32, %c0_i32_0 : i32, i32
  }
}

module attributes {stable_mosaic.version = 11 : i64} {
  func.func @_gru_disc_kernel(%arg0: i32, %arg1: i32, %arg2: memref<8x1xi32, #tpu.memory_space<vmem>>, %arg3: memref<8x8x4xf32, #tpu.memory_space<vmem>>, %arg4: memref<4x384xf32, #tpu.memory_space<vmem>>, %arg5: memref<128x256xf32, #tpu.memory_space<vmem>>, %arg6: memref<128x128xf32, #tpu.memory_space<vmem>>, %arg7: memref<1x384xf32, #tpu.memory_space<vmem>>, %arg8: memref<1x128xf32, #tpu.memory_space<vmem>>, %arg9: memref<128x1xf32, #tpu.memory_space<vmem>>, %arg10: memref<1x1xf32, #tpu.memory_space<vmem>>, %arg11: memref<8x1xf32, #tpu.memory_space<vmem>>, %arg12: memref<8x1xf32, #tpu.memory_space<vmem>>, %arg13: memref<8x128xf32, #tpu.memory_space<vmem>>, %arg14: memref<64x384xf32, #tpu.memory_space<vmem>>) attributes {dimension_semantics = [#tpu.dimension_semantics<parallel>, #tpu.dimension_semantics<arbitrary>], iteration_bounds = array<i64: 1, 1>, scalar_prefetch = 0 : i64, scratch_operands = 2 : i64, tpu.core_type = #tpu.core_type<tc>, window_params = [{transform_indices = @transform_0, window_bounds = array<i64: 8, 1>}, {transform_indices = @transform_1, window_bounds = array<i64: 8, 8, 4>}, {pipeline_mode = #tpu.pipeline_mode<synchronous>, transform_indices = @transform_2, window_bounds = array<i64: 4, 384>}, {pipeline_mode = #tpu.pipeline_mode<synchronous>, transform_indices = @transform_3, window_bounds = array<i64: 128, 256>}, {pipeline_mode = #tpu.pipeline_mode<synchronous>, transform_indices = @transform_4, window_bounds = array<i64: 128, 128>}, {pipeline_mode = #tpu.pipeline_mode<synchronous>, transform_indices = @transform_5, window_bounds = array<i64: 1, 384>}, {pipeline_mode = #tpu.pipeline_mode<synchronous>, transform_indices = @transform_6, window_bounds = array<i64: 1, 128>}, {pipeline_mode = #tpu.pipeline_mode<synchronous>, transform_indices = @transform_7, window_bounds = array<i64: 128, 1>}, {pipeline_mode = #tpu.pipeline_mode<synchronous>, transform_indices = @transform_8, window_bounds = array<i64: 1, 1>}, {transform_indices = @transform_9, window_bounds = array<i64: 8, 1>}, {transform_indices = @transform_10, window_bounds = array<i64: 8, 1>}]} {
    %c0_i32 = arith.constant 0 : i32
    %0 = arith.cmpi eq, %arg1, %c0_i32 : i32
    %1 = arith.extui %0 : i1 to i32
    %c0_i32_0 = arith.constant 0 : i32
    %2 = arith.cmpi ne, %1, %c0_i32_0 : i32
    scf.if %2 {
      %cst_81 = arith.constant 0.000000e+00 : f32
      %319 = vector.broadcast %cst_81 : f32 to vector<8x128xf32>
      %c0_82 = arith.constant 0 : index
      %c0_83 = arith.constant 0 : index
      %320 = vector.load %arg13[%c0_82, %c0_83] : memref<8x128xf32, #tpu.memory_space<vmem>>, vector<8x128xf32>
      tpu.vector_store %arg13[%c0_82, %c0_83], %319 {strides = array<i32>} : memref<8x128xf32, #tpu.memory_space<vmem>>, vector<8x128xf32>,
    } else {
    }
    %c0 = arith.constant 0 : index
    %c0_1 = arith.constant 0 : index
    %c0_2 = arith.constant 0 : index
    %3 = vector.load %arg3[%c0, %c0_1, %c0_2] : memref<8x8x4xf32, #tpu.memory_space<vmem>>, vector<8x8x4xf32>
    %4 = vector.shape_cast %3 : vector<8x8x4xf32> to vector<64x4xf32>
    %c0_3 = arith.constant 0 : index
    %c0_4 = arith.constant 0 : index
    %5 = vector.load %arg4[%c0_3, %c0_4] : memref<4x384xf32, #tpu.memory_space<vmem>>, vector<4x384xf32>
    %cst = arith.constant dense<0.000000e+00> : vector<64x384xf32>
    %6 = tpu.matmul %4, %5, %cst {dimension_numbers = #tpu.dot_dimension_numbers<[1], [0], [0], [1], [0, 0, 1, 1], [], []>} : vector<64x4xf32>, vector<4x384xf32>, vector<64x384xf32> -> vector<64x384xf32>
    %c0_5 = arith.constant 0 : index
    %c0_6 = arith.constant 0 : index
    %7 = vector.load %arg7[%c0_5, %c0_6] : memref<1x384xf32, #tpu.memory_space<vmem>>, vector<1x384xf32>
    %8 = vector.broadcast %7 : vector<1x384xf32> to vector<64x384xf32>
    %9 = arith.addf %6, %8 : vector<64x384xf32>
    %c0_7 = arith.constant 0 : index
    %c0_8 = arith.constant 0 : index
    %10 = vector.load %arg14[%c0_7, %c0_8] : memref<64x384xf32, #tpu.memory_space<vmem>>, vector<64x384xf32>
    tpu.vector_store %arg14[%c0_7, %c0_8], %9 {strides = array<i32>} : memref<64x384xf32, #tpu.memory_space<vmem>>, vector<64x384xf32>,
    %c0_9 = arith.constant 0 : index
    %c0_10 = arith.constant 0 : index
    %11 = vector.load %arg5[%c0_9, %c0_10] : memref<128x256xf32, #tpu.memory_space<vmem>>, vector<128x256xf32>
    %c0_11 = arith.constant 0 : index
    %c0_12 = arith.constant 0 : index
    %12 = vector.load %arg6[%c0_11, %c0_12] : memref<128x128xf32, #tpu.memory_space<vmem>>, vector<128x128xf32>
    %c0_13 = arith.constant 0 : index
    %c0_14 = arith.constant 0 : index
    %13 = vector.load %arg8[%c0_13, %c0_14] : memref<1x128xf32, #tpu.memory_space<vmem>>, vector<1x128xf32>
    %c0_15 = arith.constant 0 : index
    %c0_16 = arith.constant 0 : index
    %14 = vector.load %arg2[%c0_15, %c0_16] : memref<8x1xi32, #tpu.memory_space<vmem>>, vector<8x1xi32>
    %15 = vector.shape_cast %14 : vector<8x1xi32> to vector<8x1xi32>
    %16 = vector.broadcast %15 : vector<8x1xi32> to vector<8x128xi32>
    %c8_i32 = arith.constant 8 : i32
    %17 = arith.muli %arg1, %c8_i32 : i32
    %c0_17 = arith.constant 0 : index
    %c0_18 = arith.constant 0 : index
    %18 = vector.load %arg13[%c0_17, %c0_18] : memref<8x128xf32, #tpu.memory_space<vmem>>, vector<8x128xf32>
    %c0_i32_19 = arith.constant 0 : i32
    %c8_i32_20 = arith.constant 8 : i32
    %19 = arith.muli %c0_i32_19, %c8_i32_20 : i32
    %20 = tpu.assume_multiple %19, 8 : i32
    %21 = arith.index_cast %20 : i32 to index
    %c0_21 = arith.constant 0 : index
    %22 = vector.load %arg14[%21, %c0_21] : memref<64x384xf32, #tpu.memory_space<vmem>>, vector<8x384xf32>
    %cst_22 = arith.constant dense<0.000000e+00> : vector<8x256xf32>
    %23 = tpu.matmul %18, %11, %cst_22 {dimension_numbers = #tpu.dot_dimension_numbers<[1], [0], [0], [1], [0, 0, 1, 1], [], []>} : vector<8x128xf32>, vector<128x256xf32>, vector<8x256xf32> -> vector<8x256xf32>
    %24 = vector.extract_strided_slice %22 {offsets = [0, 0], sizes = [8, 128], strides = [1, 1]} : vector<8x384xf32> to vector<8x128xf32>
    %25 = vector.extract_strided_slice %23 {offsets = [0, 0], sizes = [8, 128], strides = [1, 1]} : vector<8x256xf32> to vector<8x128xf32>
    %26 = arith.addf %24, %25 : vector<8x128xf32>
    %27 = arith.negf %26 : vector<8x128xf32>
    %28 = math.exp %27 : vector<8x128xf32>
    %cst_23 = arith.constant 1.000000e+00 : f32
    %29 = vector.broadcast %cst_23 : f32 to vector<8x128xf32>
    %30 = arith.addf %29, %28 : vector<8x128xf32>
    %31 = arith.divf %29, %30 : vector<8x128xf32>
    %32 = vector.extract_strided_slice %22 {offsets = [0, 128], sizes = [8, 128], strides = [1, 1]} : vector<8x384xf32> to vector<8x128xf32>
    %33 = vector.extract_strided_slice %23 {offsets = [0, 128], sizes = [8, 128], strides = [1, 1]} : vector<8x256xf32> to vector<8x128xf32>
    %34 = arith.addf %32, %33 : vector<8x128xf32>
    %35 = arith.negf %34 : vector<8x128xf32>
    %36 = math.exp %35 : vector<8x128xf32>
    %cst_24 = arith.constant 1.000000e+00 : f32
    %37 = vector.broadcast %cst_24 : f32 to vector<8x128xf32>
    %38 = arith.addf %37, %36 : vector<8x128xf32>
    %39 = arith.divf %37, %38 : vector<8x128xf32>
    %cst_25 = arith.constant dense<0.000000e+00> : vector<8x128xf32>
    %40 = tpu.matmul %18, %12, %cst_25 {dimension_numbers = #tpu.dot_dimension_numbers<[1], [0], [0], [1], [0, 0, 1, 1], [], []>} : vector<8x128xf32>, vector<128x128xf32>, vector<8x128xf32> -> vector<8x128xf32>
    %41 = vector.extract_strided_slice %22 {offsets = [0, 256], sizes = [8, 128], strides = [1, 1]} : vector<8x384xf32> to vector<8x128xf32>
    %42 = vector.broadcast %13 : vector<1x128xf32> to vector<8x128xf32>
    %43 = arith.addf %40, %42 : vector<8x128xf32>
    %44 = arith.mulf %31, %43 : vector<8x128xf32>
    %45 = arith.addf %41, %44 : vector<8x128xf32>
    %46 = math.tanh %45 : vector<8x128xf32>
    %cst_26 = arith.constant 1.000000e+00 : f32
    %47 = vector.broadcast %cst_26 : f32 to vector<8x128xf32>
    %48 = arith.subf %47, %39 : vector<8x128xf32>
    %49 = arith.mulf %48, %46 : vector<8x128xf32>
    %50 = arith.mulf %39, %18 : vector<8x128xf32>
    %51 = arith.addf %49, %50 : vector<8x128xf32>
    %52 = arith.addi %17, %c0_i32_19 : i32
    %53 = vector.broadcast %52 : i32 to vector<8x128xi32>
    %54 = arith.cmpi slt, %53, %16 : vector<8x128xi32>
    %55 = arith.select %54, %51, %18 : vector<8x128xi1>, vector<8x128xf32>
    %c1_i32 = arith.constant 1 : i32
    %c8_i32_27 = arith.constant 8 : i32
    %56 = arith.muli %c1_i32, %c8_i32_27 : i32
    %57 = tpu.assume_multiple %56, 8 : i32
    %58 = arith.index_cast %57 : i32 to index
    %c0_28 = arith.constant 0 : index
    %59 = vector.load %arg14[%58, %c0_28] : memref<64x384xf32, #tpu.memory_space<vmem>>, vector<8x384xf32>
    %cst_29 = arith.constant dense<0.000000e+00> : vector<8x256xf32>
    %60 = tpu.matmul %55, %11, %cst_29 {dimension_numbers = #tpu.dot_dimension_numbers<[1], [0], [0], [1], [0, 0, 1, 1], [], []>} : vector<8x128xf32>, vector<128x256xf32>, vector<8x256xf32> -> vector<8x256xf32>
    %61 = vector.extract_strided_slice %59 {offsets = [0, 0], sizes = [8, 128], strides = [1, 1]} : vector<8x384xf32> to vector<8x128xf32>
    %62 = vector.extract_strided_slice %60 {offsets = [0, 0], sizes = [8, 128], strides = [1, 1]} : vector<8x256xf32> to vector<8x128xf32>
    %63 = arith.addf %61, %62 : vector<8x128xf32>
    %64 = arith.negf %63 : vector<8x128xf32>
    %65 = math.exp %64 : vector<8x128xf32>
    %cst_30 = arith.constant 1.000000e+00 : f32
    %66 = vector.broadcast %cst_30 : f32 to vector<8x128xf32>
    %67 = arith.addf %66, %65 : vector<8x128xf32>
    %68 = arith.divf %66, %67 : vector<8x128xf32>
    %69 = vector.extract_strided_slice %59 {offsets = [0, 128], sizes = [8, 128], strides = [1, 1]} : vector<8x384xf32> to vector<8x128xf32>
    %70 = vector.extract_strided_slice %60 {offsets = [0, 128], sizes = [8, 128], strides = [1, 1]} : vector<8x256xf32> to vector<8x128xf32>
    %71 = arith.addf %69, %70 : vector<8x128xf32>
    %72 = arith.negf %71 : vector<8x128xf32>
    %73 = math.exp %72 : vector<8x128xf32>
    %cst_31 = arith.constant 1.000000e+00 : f32
    %74 = vector.broadcast %cst_31 : f32 to vector<8x128xf32>
    %75 = arith.addf %74, %73 : vector<8x128xf32>
    %76 = arith.divf %74, %75 : vector<8x128xf32>
    %cst_32 = arith.constant dense<0.000000e+00> : vector<8x128xf32>
    %77 = tpu.matmul %55, %12, %cst_32 {dimension_numbers = #tpu.dot_dimension_numbers<[1], [0], [0], [1], [0, 0, 1, 1], [], []>} : vector<8x128xf32>, vector<128x128xf32>, vector<8x128xf32> -> vector<8x128xf32>
    %78 = vector.extract_strided_slice %59 {offsets = [0, 256], sizes = [8, 128], strides = [1, 1]} : vector<8x384xf32> to vector<8x128xf32>
    %79 = vector.broadcast %13 : vector<1x128xf32> to vector<8x128xf32>
    %80 = arith.addf %77, %79 : vector<8x128xf32>
    %81 = arith.mulf %68, %80 : vector<8x128xf32>
    %82 = arith.addf %78, %81 : vector<8x128xf32>
    %83 = math.tanh %82 : vector<8x128xf32>
    %cst_33 = arith.constant 1.000000e+00 : f32
    %84 = vector.broadcast %cst_33 : f32 to vector<8x128xf32>
    %85 = arith.subf %84, %76 : vector<8x128xf32>
    %86 = arith.mulf %85, %83 : vector<8x128xf32>
    %87 = arith.mulf %76, %55 : vector<8x128xf32>
    %88 = arith.addf %86, %87 : vector<8x128xf32>
    %89 = arith.addi %17, %c1_i32 : i32
    %90 = vector.broadcast %89 : i32 to vector<8x128xi32>
    %91 = arith.cmpi slt, %90, %16 : vector<8x128xi32>
    %92 = arith.select %91, %88, %55 : vector<8x128xi1>, vector<8x128xf32>
    %c2_i32 = arith.constant 2 : i32
    %c8_i32_34 = arith.constant 8 : i32
    %93 = arith.muli %c2_i32, %c8_i32_34 : i32
    %94 = tpu.assume_multiple %93, 8 : i32
    %95 = arith.index_cast %94 : i32 to index
    %c0_35 = arith.constant 0 : index
    %96 = vector.load %arg14[%95, %c0_35] : memref<64x384xf32, #tpu.memory_space<vmem>>, vector<8x384xf32>
    %cst_36 = arith.constant dense<0.000000e+00> : vector<8x256xf32>
    %97 = tpu.matmul %92, %11, %cst_36 {dimension_numbers = #tpu.dot_dimension_numbers<[1], [0], [0], [1], [0, 0, 1, 1], [], []>} : vector<8x128xf32>, vector<128x256xf32>, vector<8x256xf32> -> vector<8x256xf32>
    %98 = vector.extract_strided_slice %96 {offsets = [0, 0], sizes = [8, 128], strides = [1, 1]} : vector<8x384xf32> to vector<8x128xf32>
    %99 = vector.extract_strided_slice %97 {offsets = [0, 0], sizes = [8, 128], strides = [1, 1]} : vector<8x256xf32> to vector<8x128xf32>
    %100 = arith.addf %98, %99 : vector<8x128xf32>
    %101 = arith.negf %100 : vector<8x128xf32>
    %102 = math.exp %101 : vector<8x128xf32>
    %cst_37 = arith.constant 1.000000e+00 : f32
    %103 = vector.broadcast %cst_37 : f32 to vector<8x128xf32>
    %104 = arith.addf %103, %102 : vector<8x128xf32>
    %105 = arith.divf %103, %104 : vector<8x128xf32>
    %106 = vector.extract_strided_slice %96 {offsets = [0, 128], sizes = [8, 128], strides = [1, 1]} : vector<8x384xf32> to vector<8x128xf32>
    %107 = vector.extract_strided_slice %97 {offsets = [0, 128], sizes = [8, 128], strides = [1, 1]} : vector<8x256xf32> to vector<8x128xf32>
    %108 = arith.addf %106, %107 : vector<8x128xf32>
    %109 = arith.negf %108 : vector<8x128xf32>
    %110 = math.exp %109 : vector<8x128xf32>
    %cst_38 = arith.constant 1.000000e+00 : f32
    %111 = vector.broadcast %cst_38 : f32 to vector<8x128xf32>
    %112 = arith.addf %111, %110 : vector<8x128xf32>
    %113 = arith.divf %111, %112 : vector<8x128xf32>
    %cst_39 = arith.constant dense<0.000000e+00> : vector<8x128xf32>
    %114 = tpu.matmul %92, %12, %cst_39 {dimension_numbers = #tpu.dot_dimension_numbers<[1], [0], [0], [1], [0, 0, 1, 1], [], []>} : vector<8x128xf32>, vector<128x128xf32>, vector<8x128xf32> -> vector<8x128xf32>
    %115 = vector.extract_strided_slice %96 {offsets = [0, 256], sizes = [8, 128], strides = [1, 1]} : vector<8x384xf32> to vector<8x128xf32>
    %116 = vector.broadcast %13 : vector<1x128xf32> to vector<8x128xf32>
    %117 = arith.addf %114, %116 : vector<8x128xf32>
    %118 = arith.mulf %105, %117 : vector<8x128xf32>
    %119 = arith.addf %115, %118 : vector<8x128xf32>
    %120 = math.tanh %119 : vector<8x128xf32>
    %cst_40 = arith.constant 1.000000e+00 : f32
    %121 = vector.broadcast %cst_40 : f32 to vector<8x128xf32>
    %122 = arith.subf %121, %113 : vector<8x128xf32>
    %123 = arith.mulf %122, %120 : vector<8x128xf32>
    %124 = arith.mulf %113, %92 : vector<8x128xf32>
    %125 = arith.addf %123, %124 : vector<8x128xf32>
    %126 = arith.addi %17, %c2_i32 : i32
    %127 = vector.broadcast %126 : i32 to vector<8x128xi32>
    %128 = arith.cmpi slt, %127, %16 : vector<8x128xi32>
    %129 = arith.select %128, %125, %92 : vector<8x128xi1>, vector<8x128xf32>
    %c3_i32 = arith.constant 3 : i32
    %c8_i32_41 = arith.constant 8 : i32
    %130 = arith.muli %c3_i32, %c8_i32_41 : i32
    %131 = tpu.assume_multiple %130, 8 : i32
    %132 = arith.index_cast %131 : i32 to index
    %c0_42 = arith.constant 0 : index
    %133 = vector.load %arg14[%132, %c0_42] : memref<64x384xf32, #tpu.memory_space<vmem>>, vector<8x384xf32>
    %cst_43 = arith.constant dense<0.000000e+00> : vector<8x256xf32>
    %134 = tpu.matmul %129, %11, %cst_43 {dimension_numbers = #tpu.dot_dimension_numbers<[1], [0], [0], [1], [0, 0, 1, 1], [], []>} : vector<8x128xf32>, vector<128x256xf32>, vector<8x256xf32> -> vector<8x256xf32>
    %135 = vector.extract_strided_slice %133 {offsets = [0, 0], sizes = [8, 128], strides = [1, 1]} : vector<8x384xf32> to vector<8x128xf32>
    %136 = vector.extract_strided_slice %134 {offsets = [0, 0], sizes = [8, 128], strides = [1, 1]} : vector<8x256xf32> to vector<8x128xf32>
    %137 = arith.addf %135, %136 : vector<8x128xf32>
    %138 = arith.negf %137 : vector<8x128xf32>
    %139 = math.exp %138 : vector<8x128xf32>
    %cst_44 = arith.constant 1.000000e+00 : f32
    %140 = vector.broadcast %cst_44 : f32 to vector<8x128xf32>
    %141 = arith.addf %140, %139 : vector<8x128xf32>
    %142 = arith.divf %140, %141 : vector<8x128xf32>
    %143 = vector.extract_strided_slice %133 {offsets = [0, 128], sizes = [8, 128], strides = [1, 1]} : vector<8x384xf32> to vector<8x128xf32>
    %144 = vector.extract_strided_slice %134 {offsets = [0, 128], sizes = [8, 128], strides = [1, 1]} : vector<8x256xf32> to vector<8x128xf32>
    %145 = arith.addf %143, %144 : vector<8x128xf32>
    %146 = arith.negf %145 : vector<8x128xf32>
    %147 = math.exp %146 : vector<8x128xf32>
    %cst_45 = arith.constant 1.000000e+00 : f32
    %148 = vector.broadcast %cst_45 : f32 to vector<8x128xf32>
    %149 = arith.addf %148, %147 : vector<8x128xf32>
    %150 = arith.divf %148, %149 : vector<8x128xf32>
    %cst_46 = arith.constant dense<0.000000e+00> : vector<8x128xf32>
    %151 = tpu.matmul %129, %12, %cst_46 {dimension_numbers = #tpu.dot_dimension_numbers<[1], [0], [0], [1], [0, 0, 1, 1], [], []>} : vector<8x128xf32>, vector<128x128xf32>, vector<8x128xf32> -> vector<8x128xf32>
    %152 = vector.extract_strided_slice %133 {offsets = [0, 256], sizes = [8, 128], strides = [1, 1]} : vector<8x384xf32> to vector<8x128xf32>
    %153 = vector.broadcast %13 : vector<1x128xf32> to vector<8x128xf32>
    %154 = arith.addf %151, %153 : vector<8x128xf32>
    %155 = arith.mulf %142, %154 : vector<8x128xf32>
    %156 = arith.addf %152, %155 : vector<8x128xf32>
    %157 = math.tanh %156 : vector<8x128xf32>
    %cst_47 = arith.constant 1.000000e+00 : f32
    %158 = vector.broadcast %cst_47 : f32 to vector<8x128xf32>
    %159 = arith.subf %158, %150 : vector<8x128xf32>
    %160 = arith.mulf %159, %157 : vector<8x128xf32>
    %161 = arith.mulf %150, %129 : vector<8x128xf32>
    %162 = arith.addf %160, %161 : vector<8x128xf32>
    %163 = arith.addi %17, %c3_i32 : i32
    %164 = vector.broadcast %163 : i32 to vector<8x128xi32>
    %165 = arith.cmpi slt, %164, %16 : vector<8x128xi32>
    %166 = arith.select %165, %162, %129 : vector<8x128xi1>, vector<8x128xf32>
    %c4_i32 = arith.constant 4 : i32
    %c8_i32_48 = arith.constant 8 : i32
    %167 = arith.muli %c4_i32, %c8_i32_48 : i32
    %168 = tpu.assume_multiple %167, 8 : i32
    %169 = arith.index_cast %168 : i32 to index
    %c0_49 = arith.constant 0 : index
    %170 = vector.load %arg14[%169, %c0_49] : memref<64x384xf32, #tpu.memory_space<vmem>>, vector<8x384xf32>
    %cst_50 = arith.constant dense<0.000000e+00> : vector<8x256xf32>
    %171 = tpu.matmul %166, %11, %cst_50 {dimension_numbers = #tpu.dot_dimension_numbers<[1], [0], [0], [1], [0, 0, 1, 1], [], []>} : vector<8x128xf32>, vector<128x256xf32>, vector<8x256xf32> -> vector<8x256xf32>
    %172 = vector.extract_strided_slice %170 {offsets = [0, 0], sizes = [8, 128], strides = [1, 1]} : vector<8x384xf32> to vector<8x128xf32>
    %173 = vector.extract_strided_slice %171 {offsets = [0, 0], sizes = [8, 128], strides = [1, 1]} : vector<8x256xf32> to vector<8x128xf32>
    %174 = arith.addf %172, %173 : vector<8x128xf32>
    %175 = arith.negf %174 : vector<8x128xf32>
    %176 = math.exp %175 : vector<8x128xf32>
    %cst_51 = arith.constant 1.000000e+00 : f32
    %177 = vector.broadcast %cst_51 : f32 to vector<8x128xf32>
    %178 = arith.addf %177, %176 : vector<8x128xf32>
    %179 = arith.divf %177, %178 : vector<8x128xf32>
    %180 = vector.extract_strided_slice %170 {offsets = [0, 128], sizes = [8, 128], strides = [1, 1]} : vector<8x384xf32> to vector<8x128xf32>
    %181 = vector.extract_strided_slice %171 {offsets = [0, 128], sizes = [8, 128], strides = [1, 1]} : vector<8x256xf32> to vector<8x128xf32>
    %182 = arith.addf %180, %181 : vector<8x128xf32>
    %183 = arith.negf %182 : vector<8x128xf32>
    %184 = math.exp %183 : vector<8x128xf32>
    %cst_52 = arith.constant 1.000000e+00 : f32
    %185 = vector.broadcast %cst_52 : f32 to vector<8x128xf32>
    %186 = arith.addf %185, %184 : vector<8x128xf32>
    %187 = arith.divf %185, %186 : vector<8x128xf32>
    %cst_53 = arith.constant dense<0.000000e+00> : vector<8x128xf32>
    %188 = tpu.matmul %166, %12, %cst_53 {dimension_numbers = #tpu.dot_dimension_numbers<[1], [0], [0], [1], [0, 0, 1, 1], [], []>} : vector<8x128xf32>, vector<128x128xf32>, vector<8x128xf32> -> vector<8x128xf32>
    %189 = vector.extract_strided_slice %170 {offsets = [0, 256], sizes = [8, 128], strides = [1, 1]} : vector<8x384xf32> to vector<8x128xf32>
    %190 = vector.broadcast %13 : vector<1x128xf32> to vector<8x128xf32>
    %191 = arith.addf %188, %190 : vector<8x128xf32>
    %192 = arith.mulf %179, %191 : vector<8x128xf32>
    %193 = arith.addf %189, %192 : vector<8x128xf32>
    %194 = math.tanh %193 : vector<8x128xf32>
    %cst_54 = arith.constant 1.000000e+00 : f32
    %195 = vector.broadcast %cst_54 : f32 to vector<8x128xf32>
    %196 = arith.subf %195, %187 : vector<8x128xf32>
    %197 = arith.mulf %196, %194 : vector<8x128xf32>
    %198 = arith.mulf %187, %166 : vector<8x128xf32>
    %199 = arith.addf %197, %198 : vector<8x128xf32>
    %200 = arith.addi %17, %c4_i32 : i32
    %201 = vector.broadcast %200 : i32 to vector<8x128xi32>
    %202 = arith.cmpi slt, %201, %16 : vector<8x128xi32>
    %203 = arith.select %202, %199, %166 : vector<8x128xi1>, vector<8x128xf32>
    %c5_i32 = arith.constant 5 : i32
    %c8_i32_55 = arith.constant 8 : i32
    %204 = arith.muli %c5_i32, %c8_i32_55 : i32
    %205 = tpu.assume_multiple %204, 8 : i32
    %206 = arith.index_cast %205 : i32 to index
    %c0_56 = arith.constant 0 : index
    %207 = vector.load %arg14[%206, %c0_56] : memref<64x384xf32, #tpu.memory_space<vmem>>, vector<8x384xf32>
    %cst_57 = arith.constant dense<0.000000e+00> : vector<8x256xf32>
    %208 = tpu.matmul %203, %11, %cst_57 {dimension_numbers = #tpu.dot_dimension_numbers<[1], [0], [0], [1], [0, 0, 1, 1], [], []>} : vector<8x128xf32>, vector<128x256xf32>, vector<8x256xf32> -> vector<8x256xf32>
    %209 = vector.extract_strided_slice %207 {offsets = [0, 0], sizes = [8, 128], strides = [1, 1]} : vector<8x384xf32> to vector<8x128xf32>
    %210 = vector.extract_strided_slice %208 {offsets = [0, 0], sizes = [8, 128], strides = [1, 1]} : vector<8x256xf32> to vector<8x128xf32>
    %211 = arith.addf %209, %210 : vector<8x128xf32>
    %212 = arith.negf %211 : vector<8x128xf32>
    %213 = math.exp %212 : vector<8x128xf32>
    %cst_58 = arith.constant 1.000000e+00 : f32
    %214 = vector.broadcast %cst_58 : f32 to vector<8x128xf32>
    %215 = arith.addf %214, %213 : vector<8x128xf32>
    %216 = arith.divf %214, %215 : vector<8x128xf32>
    %217 = vector.extract_strided_slice %207 {offsets = [0, 128], sizes = [8, 128], strides = [1, 1]} : vector<8x384xf32> to vector<8x128xf32>
    %218 = vector.extract_strided_slice %208 {offsets = [0, 128], sizes = [8, 128], strides = [1, 1]} : vector<8x256xf32> to vector<8x128xf32>
    %219 = arith.addf %217, %218 : vector<8x128xf32>
    %220 = arith.negf %219 : vector<8x128xf32>
    %221 = math.exp %220 : vector<8x128xf32>
    %cst_59 = arith.constant 1.000000e+00 : f32
    %222 = vector.broadcast %cst_59 : f32 to vector<8x128xf32>
    %223 = arith.addf %222, %221 : vector<8x128xf32>
    %224 = arith.divf %222, %223 : vector<8x128xf32>
    %cst_60 = arith.constant dense<0.000000e+00> : vector<8x128xf32>
    %225 = tpu.matmul %203, %12, %cst_60 {dimension_numbers = #tpu.dot_dimension_numbers<[1], [0], [0], [1], [0, 0, 1, 1], [], []>} : vector<8x128xf32>, vector<128x128xf32>, vector<8x128xf32> -> vector<8x128xf32>
    %226 = vector.extract_strided_slice %207 {offsets = [0, 256], sizes = [8, 128], strides = [1, 1]} : vector<8x384xf32> to vector<8x128xf32>
    %227 = vector.broadcast %13 : vector<1x128xf32> to vector<8x128xf32>
    %228 = arith.addf %225, %227 : vector<8x128xf32>
    %229 = arith.mulf %216, %228 : vector<8x128xf32>
    %230 = arith.addf %226, %229 : vector<8x128xf32>
    %231 = math.tanh %230 : vector<8x128xf32>
    %cst_61 = arith.constant 1.000000e+00 : f32
    %232 = vector.broadcast %cst_61 : f32 to vector<8x128xf32>
    %233 = arith.subf %232, %224 : vector<8x128xf32>
    %234 = arith.mulf %233, %231 : vector<8x128xf32>
    %235 = arith.mulf %224, %203 : vector<8x128xf32>
    %236 = arith.addf %234, %235 : vector<8x128xf32>
    %237 = arith.addi %17, %c5_i32 : i32
    %238 = vector.broadcast %237 : i32 to vector<8x128xi32>
    %239 = arith.cmpi slt, %238, %16 : vector<8x128xi32>
    %240 = arith.select %239, %236, %203 : vector<8x128xi1>, vector<8x128xf32>
    %c6_i32 = arith.constant 6 : i32
    %c8_i32_62 = arith.constant 8 : i32
    %241 = arith.muli %c6_i32, %c8_i32_62 : i32
    %242 = tpu.assume_multiple %241, 8 : i32
    %243 = arith.index_cast %242 : i32 to index
    %c0_63 = arith.constant 0 : index
    %244 = vector.load %arg14[%243, %c0_63] : memref<64x384xf32, #tpu.memory_space<vmem>>, vector<8x384xf32>
    %cst_64 = arith.constant dense<0.000000e+00> : vector<8x256xf32>
    %245 = tpu.matmul %240, %11, %cst_64 {dimension_numbers = #tpu.dot_dimension_numbers<[1], [0], [0], [1], [0, 0, 1, 1], [], []>} : vector<8x128xf32>, vector<128x256xf32>, vector<8x256xf32> -> vector<8x256xf32>
    %246 = vector.extract_strided_slice %244 {offsets = [0, 0], sizes = [8, 128], strides = [1, 1]} : vector<8x384xf32> to vector<8x128xf32>
    %247 = vector.extract_strided_slice %245 {offsets = [0, 0], sizes = [8, 128], strides = [1, 1]} : vector<8x256xf32> to vector<8x128xf32>
    %248 = arith.addf %246, %247 : vector<8x128xf32>
    %249 = arith.negf %248 : vector<8x128xf32>
    %250 = math.exp %249 : vector<8x128xf32>
    %cst_65 = arith.constant 1.000000e+00 : f32
    %251 = vector.broadcast %cst_65 : f32 to vector<8x128xf32>
    %252 = arith.addf %251, %250 : vector<8x128xf32>
    %253 = arith.divf %251, %252 : vector<8x128xf32>
    %254 = vector.extract_strided_slice %244 {offsets = [0, 128], sizes = [8, 128], strides = [1, 1]} : vector<8x384xf32> to vector<8x128xf32>
    %255 = vector.extract_strided_slice %245 {offsets = [0, 128], sizes = [8, 128], strides = [1, 1]} : vector<8x256xf32> to vector<8x128xf32>
    %256 = arith.addf %254, %255 : vector<8x128xf32>
    %257 = arith.negf %256 : vector<8x128xf32>
    %258 = math.exp %257 : vector<8x128xf32>
    %cst_66 = arith.constant 1.000000e+00 : f32
    %259 = vector.broadcast %cst_66 : f32 to vector<8x128xf32>
    %260 = arith.addf %259, %258 : vector<8x128xf32>
    %261 = arith.divf %259, %260 : vector<8x128xf32>
    %cst_67 = arith.constant dense<0.000000e+00> : vector<8x128xf32>
    %262 = tpu.matmul %240, %12, %cst_67 {dimension_numbers = #tpu.dot_dimension_numbers<[1], [0], [0], [1], [0, 0, 1, 1], [], []>} : vector<8x128xf32>, vector<128x128xf32>, vector<8x128xf32> -> vector<8x128xf32>
    %263 = vector.extract_strided_slice %244 {offsets = [0, 256], sizes = [8, 128], strides = [1, 1]} : vector<8x384xf32> to vector<8x128xf32>
    %264 = vector.broadcast %13 : vector<1x128xf32> to vector<8x128xf32>
    %265 = arith.addf %262, %264 : vector<8x128xf32>
    %266 = arith.mulf %253, %265 : vector<8x128xf32>
    %267 = arith.addf %263, %266 : vector<8x128xf32>
    %268 = math.tanh %267 : vector<8x128xf32>
    %cst_68 = arith.constant 1.000000e+00 : f32
    %269 = vector.broadcast %cst_68 : f32 to vector<8x128xf32>
    %270 = arith.subf %269, %261 : vector<8x128xf32>
    %271 = arith.mulf %270, %268 : vector<8x128xf32>
    %272 = arith.mulf %261, %240 : vector<8x128xf32>
    %273 = arith.addf %271, %272 : vector<8x128xf32>
    %274 = arith.addi %17, %c6_i32 : i32
    %275 = vector.broadcast %274 : i32 to vector<8x128xi32>
    %276 = arith.cmpi slt, %275, %16 : vector<8x128xi32>
    %277 = arith.select %276, %273, %240 : vector<8x128xi1>, vector<8x128xf32>
    %c7_i32 = arith.constant 7 : i32
    %c8_i32_69 = arith.constant 8 : i32
    %278 = arith.muli %c7_i32, %c8_i32_69 : i32
    %279 = tpu.assume_multiple %278, 8 : i32
    %280 = arith.index_cast %279 : i32 to index
    %c0_70 = arith.constant 0 : index
    %281 = vector.load %arg14[%280, %c0_70] : memref<64x384xf32, #tpu.memory_space<vmem>>, vector<8x384xf32>
    %cst_71 = arith.constant dense<0.000000e+00> : vector<8x256xf32>
    %282 = tpu.matmul %277, %11, %cst_71 {dimension_numbers = #tpu.dot_dimension_numbers<[1], [0], [0], [1], [0, 0, 1, 1], [], []>} : vector<8x128xf32>, vector<128x256xf32>, vector<8x256xf32> -> vector<8x256xf32>
    %283 = vector.extract_strided_slice %281 {offsets = [0, 0], sizes = [8, 128], strides = [1, 1]} : vector<8x384xf32> to vector<8x128xf32>
    %284 = vector.extract_strided_slice %282 {offsets = [0, 0], sizes = [8, 128], strides = [1, 1]} : vector<8x256xf32> to vector<8x128xf32>
    %285 = arith.addf %283, %284 : vector<8x128xf32>
    %286 = arith.negf %285 : vector<8x128xf32>
    %287 = math.exp %286 : vector<8x128xf32>
    %cst_72 = arith.constant 1.000000e+00 : f32
    %288 = vector.broadcast %cst_72 : f32 to vector<8x128xf32>
    %289 = arith.addf %288, %287 : vector<8x128xf32>
    %290 = arith.divf %288, %289 : vector<8x128xf32>
    %291 = vector.extract_strided_slice %281 {offsets = [0, 128], sizes = [8, 128], strides = [1, 1]} : vector<8x384xf32> to vector<8x128xf32>
    %292 = vector.extract_strided_slice %282 {offsets = [0, 128], sizes = [8, 128], strides = [1, 1]} : vector<8x256xf32> to vector<8x128xf32>
    %293 = arith.addf %291, %292 : vector<8x128xf32>
    %294 = arith.negf %293 : vector<8x128xf32>
    %295 = math.exp %294 : vector<8x128xf32>
    %cst_73 = arith.constant 1.000000e+00 : f32
    %296 = vector.broadcast %cst_73 : f32 to vector<8x128xf32>
    %297 = arith.addf %296, %295 : vector<8x128xf32>
    %298 = arith.divf %296, %297 : vector<8x128xf32>
    %cst_74 = arith.constant dense<0.000000e+00> : vector<8x128xf32>
    %299 = tpu.matmul %277, %12, %cst_74 {dimension_numbers = #tpu.dot_dimension_numbers<[1], [0], [0], [1], [0, 0, 1, 1], [], []>} : vector<8x128xf32>, vector<128x128xf32>, vector<8x128xf32> -> vector<8x128xf32>
    %300 = vector.extract_strided_slice %281 {offsets = [0, 256], sizes = [8, 128], strides = [1, 1]} : vector<8x384xf32> to vector<8x128xf32>
    %301 = vector.broadcast %13 : vector<1x128xf32> to vector<8x128xf32>
    %302 = arith.addf %299, %301 : vector<8x128xf32>
    %303 = arith.mulf %290, %302 : vector<8x128xf32>
    %304 = arith.addf %300, %303 : vector<8x128xf32>
    %305 = math.tanh %304 : vector<8x128xf32>
    %cst_75 = arith.constant 1.000000e+00 : f32
    %306 = vector.broadcast %cst_75 : f32 to vector<8x128xf32>
    %307 = arith.subf %306, %298 : vector<8x128xf32>
    %308 = arith.mulf %307, %305 : vector<8x128xf32>
    %309 = arith.mulf %298, %277 : vector<8x128xf32>
    %310 = arith.addf %308, %309 : vector<8x128xf32>
    %311 = arith.addi %17, %c7_i32 : i32
    %312 = vector.broadcast %311 : i32 to vector<8x128xi32>
    %313 = arith.cmpi slt, %312, %16 : vector<8x128xi32>
    %314 = arith.select %313, %310, %277 : vector<8x128xi1>, vector<8x128xf32>
    %c8_i32_76 = arith.constant 8 : i32
    %c0_77 = arith.constant 0 : index
    %c0_78 = arith.constant 0 : index
    %315 = vector.load %arg13[%c0_77, %c0_78] : memref<8x128xf32, #tpu.memory_space<vmem>>, vector<8x128xf32>
    tpu.vector_store %arg13[%c0_77, %c0_78], %314 {strides = array<i32>} : memref<8x128xf32, #tpu.memory_space<vmem>>, vector<8x128xf32>,
    %c0_i32_79 = arith.constant 0 : i32
    %316 = arith.cmpi eq, %arg1, %c0_i32_79 : i32
    %317 = arith.extui %316 : i1 to i32
    %c0_i32_80 = arith.constant 0 : i32
    %318 = arith.cmpi ne, %317, %c0_i32_80 : i32
    scf.if %318 {
      %c0_81 = arith.constant 0 : index
      %c0_82 = arith.constant 0 : index
      %319 = vector.load %arg9[%c0_81, %c0_82] : memref<128x1xf32, #tpu.memory_space<vmem>>, vector<128x1xf32>
      %cst_83 = arith.constant dense<0.000000e+00> : vector<8x1xf32>
      %320 = tpu.matmul %314, %319, %cst_83 {dimension_numbers = #tpu.dot_dimension_numbers<[1], [0], [0], [1], [0, 0, 1, 1], [], []>} : vector<8x128xf32>, vector<128x1xf32>, vector<8x1xf32> -> vector<8x1xf32>
      %c0_84 = arith.constant 0 : index
      %c0_85 = arith.constant 0 : index
      %321 = vector.load %arg10[%c0_84, %c0_85] : memref<1x1xf32, #tpu.memory_space<vmem>>, vector<1x1xf32>
      %322 = vector.broadcast %321 : vector<1x1xf32> to vector<8x1xf32>
      %323 = arith.addf %320, %322 : vector<8x1xf32>
      %c0_86 = arith.constant 0 : index
      %c0_87 = arith.constant 0 : index
      %324 = vector.load %arg11[%c0_86, %c0_87] : memref<8x1xf32, #tpu.memory_space<vmem>>, vector<8x1xf32>
      tpu.vector_store %arg11[%c0_86, %c0_87], %323 {strides = array<i32>} : memref<8x1xf32, #tpu.memory_space<vmem>>, vector<8x1xf32>,
      %325 = arith.negf %323 : vector<8x1xf32>
      %326 = math.exp %325 : vector<8x1xf32>
      %cst_88 = arith.constant 1.000000e+00 : f32
      %327 = vector.broadcast %cst_88 : f32 to vector<8x1xf32>
      %328 = arith.addf %327, %326 : vector<8x1xf32>
      %329 = arith.divf %327, %328 : vector<8x1xf32>
      %c0_89 = arith.constant 0 : index
      %c0_90 = arith.constant 0 : index
      %330 = vector.load %arg12[%c0_89, %c0_90] : memref<8x1xf32, #tpu.memory_space<vmem>>, vector<8x1xf32>
      tpu.vector_store %arg12[%c0_89, %c0_90], %329 {strides = array<i32>} : memref<8x1xf32, #tpu.memory_space<vmem>>, vector<8x1xf32>,
    } else {
    }
    return
  }
  func.func @transform_0(%arg0: i32, %arg1: i32) -> (i32, i32) {
    %c0_i32 = arith.constant 0 : i32
    %c0_i32_0 = arith.constant 0 : i32
    return %arg0, %c0_i32 : i32, i32
  }
  func.func @transform_1(%arg0: i32, %arg1: i32) -> (i32, i32, i32) {
    %c0_i32 = arith.constant 0 : i32
    %c0_i32_0 = arith.constant 0 : i32
    return %arg1, %arg0, %c0_i32 : i32, i32, i32
  }
  func.func @transform_2(%arg0: i32, %arg1: i32) -> (i32, i32) {
    %c0_i32 = arith.constant 0 : i32
    %c0_i32_0 = arith.constant 0 : i32
    %c0_i32_1 = arith.constant 0 : i32
    return %c0_i32, %c0_i32_0 : i32, i32
  }
  func.func @transform_3(%arg0: i32, %arg1: i32) -> (i32, i32) {
    %c0_i32 = arith.constant 0 : i32
    %c0_i32_0 = arith.constant 0 : i32
    %c0_i32_1 = arith.constant 0 : i32
    return %c0_i32, %c0_i32_0 : i32, i32
  }
  func.func @transform_4(%arg0: i32, %arg1: i32) -> (i32, i32) {
    %c0_i32 = arith.constant 0 : i32
    %c0_i32_0 = arith.constant 0 : i32
    %c0_i32_1 = arith.constant 0 : i32
    return %c0_i32, %c0_i32_0 : i32, i32
  }
  func.func @transform_5(%arg0: i32, %arg1: i32) -> (i32, i32) {
    %c0_i32 = arith.constant 0 : i32
    %c0_i32_0 = arith.constant 0 : i32
    %c0_i32_1 = arith.constant 0 : i32
    return %c0_i32, %c0_i32_0 : i32, i32
  }
  func.func @transform_6(%arg0: i32, %arg1: i32) -> (i32, i32) {
    %c0_i32 = arith.constant 0 : i32
    %c0_i32_0 = arith.constant 0 : i32
    %c0_i32_1 = arith.constant 0 : i32
    return %c0_i32, %c0_i32_0 : i32, i32
  }
  func.func @transform_7(%arg0: i32, %arg1: i32) -> (i32, i32) {
    %c0_i32 = arith.constant 0 : i32
    %c0_i32_0 = arith.constant 0 : i32
    %c0_i32_1 = arith.constant 0 : i32
    return %c0_i32, %c0_i32_0 : i32, i32
  }
  func.func @transform_8(%arg0: i32, %arg1: i32) -> (i32, i32) {
    %c0_i32 = arith.constant 0 : i32
    %c0_i32_0 = arith.constant 0 : i32
    %c0_i32_1 = arith.constant 0 : i32
    return %c0_i32, %c0_i32_0 : i32, i32
  }
  func.func @transform_9(%arg0: i32, %arg1: i32) -> (i32, i32) {
    %c0_i32 = arith.constant 0 : i32
    %c0_i32_0 = arith.constant 0 : i32
    return %arg0, %c0_i32 : i32, i32
  }
  func.func @transform_10(%arg0: i32, %arg1: i32) -> (i32, i32) {
    %c0_i32 = arith.constant 0 : i32
    %c0_i32_0 = arith.constant 0 : i32
    return %arg0, %c0_i32 : i32, i32
  }
}

</mosaic_0001>

<bundles_post_ra>
// kernel: tpu_custom_call.1
= control target key start
LH: loop header
LB: loop body
LE: loop exit
PB: predicated region body
PF: predicated region fallthrough
CT: control target
= control target key end

     0   :  { %6 = vsyncpa [#allocation3], 0  ;;  %s102_s0 = inlined_call_operand.hbm [shape: f32[8,128], index: 0, kind: input, shape index: {}]   ;;  %s103_s1 = inlined_call_operand.hbm [shape: f32[8,128], index: 1, kind: output, shape index: {}]  }
   0x1   :  { %7 = vsyncpa [#allocation4], 0  ;;  %s84_s6 = smov [#allocation2]  }
   0x2   :  { %s14_s7 = sshll.u32 %s84_s6, 4  ;;  %s15_s7 = int_to_ptr.vmem [resolvable:$true] %s14_s7 }
   0x3   :  { %s48_s8 = scalar_lea.vmem %s15_s7, 128  ;;  %p53_p1 = scmp.lt.s32.totalorder %s15_s7, %s15_s7 }
   0x4   :  { %p49_p0 = scmp.ne.s32.totalorder %s15_s7, %s48_s8  ;;  %p54_p2 = scmp.lt.s32.totalorder %s48_s8, %s48_s8 }
   0x6   :  { %p55_p3 = por %p54_p2, %p53_p1 }
   0x8   :  { %p56_p4 = pnand %p55_p3, %p49_p0 }
   0xa   :  { %59 = shalt.err (!%p56_p4)
}
   0xb   :  { %17 = dma.hbm_to_vmem [thread:$0]  %s102_s0, 128, %s15_s7, [#allocation3]  }
   0xc   :  { %80 = dma.done.wait [#allocation3], 128  }
   0xd   :  { %81 = vsyncadd [#allocation3], 4294967168  ;;  %s85_s11 = smov [#allocation5]   ;;  %v21_v0 = vld [vmem:[#allocation2] sm:$0xff] }
   0xe   :  { %s29_s12 = sshll.u32 %s85_s11, 4  ;;  %22 = vst [vmem:[#allocation5] sm:$0xff] %v21_v0  ;;  %s30_s12 = int_to_ptr.vmem [resolvable:$true] %s29_s12 }
   0xf   :  { %s60_s13 = scalar_lea.vmem %s30_s12, 128  ;;  %p65_p6 = scmp.lt.s32.totalorder %s30_s12, %s30_s12 }
  0x10   :  { %p61_p5 = scmp.ne.s32.totalorder %s30_s12, %s60_s13  ;;  %p66_p7 = scmp.lt.s32.totalorder %s60_s13, %s60_s13 }
  0x12   :  { %p67_p8 = por %p66_p7, %p65_p6 }
  0x14   :  { %p68_p9 = pnand %p67_p8, %p61_p5 }
  0x16   :  { %71 = shalt.err (!%p68_p9)
}
  0x17   :  { %32 = dma.vmem_to_hbm [thread:$0]  %s30_s12, 128, %s103_s1, [#allocation4]  }
  0x18   :  { %82 = dma.done.wait [#allocation4], 128  }
  0x19   :  { %83 = vsyncadd [#allocation4], 4294967168 }
  0x1a   :  { %36 = vsyncpa [#allocation3], 1 }
  0x1b   :  { %37 = vsyncpa [#allocation4], 1 }

// kernel: discriminator_forward.1
= control target key start
LH: loop header
LB: loop body
LE: loop exit
PB: predicated region body
PF: predicated region fallthrough
CT: control target
= control target key end

     0   :  { %vm96_vm0 = vcmask 1043456   ;;  %v3952_v1 = vmov 0.0   ;;  %vm71_vm1 = vcmask 31744   ;;  %v2580_v4 = vmov 0   ;;  %s3941_s2 = inlined_call_operand.vmem [shape: f32[4,384], index: 2, kind: input, shape index: {}]   ;;  %s3942_s1 = inlined_call_operand.vmem [shape: f32[8,8,4], index: 1, kind: input, shape index: {}]   ;;  %s3943_s3 = inlined_call_operand.vmem [shape: f32[128,256], index: 3, kind: input, shape index: {}]   ;;  %s3944_s4 = inlined_call_operand.vmem [shape: f32[128,128], index: 4, kind: input, shape index: {}]   ;;  %s3945_s0 = inlined_call_operand.vmem [shape: s32[8,1], index: 0, kind: input, shape index: {}]   ;;  %s3946_s5 = inlined_call_operand.vmem [shape: f32[1,384], index: 5, kind: input, shape index: {}]   ;;  %s3947_s6 = inlined_call_operand.vmem [shape: f32[1,128], index: 6, kind: input, shape index: {}]   ;;  %s3948_s7 = inlined_call_operand.vmem [shape: f32[128,1], index: 7, kind: input, shape index: {}]   ;;  %s3949_s8 = inlined_call_operand.<no memory space> [shape: f32[1,1], index: 8, kind: input, shape index: {}]   ;;  %s3950_s9 = inlined_call_operand.vmem [shape: f32[8,1], index: 9, kind: output, shape index: {0}]   ;;  %s3951_s10 = inlined_call_operand.vmem [shape: f32[8,1], index: 10, kind: output, shape index: {1}]  }
   0x1   :  { %v49_v0 = vld [vmem:[%s3941_s2] sm:$0xff]  ;;  %167 = vmatprep.mubr.f32.mxu0 %v3952_v1  ;;  %2444 = vset.pattern.permute.xlu0 %v2580_v4  ;;  %v2648_v5 = vld [vmem:[%s3943_s3 + $0xf8] sm:$0xff]  ;;  %v2654_v6 = vld [vmem:[%s3943_s3 + $0xf0] sm:$0xff]  ;;  %vm2581_vm2 = vmmov 0   ;;  %v53_v62 = vlaneseq  ;;  %vm1878_vm11 = vcmask 7168  }
   0x2   :  { %v41_v2 = vld [vmem:[%s3942_s1] sm:$0xff]  ;;  %v70_v3 = vcombine.high %v49_v0, %v49_v0  ;;  %3972 = vst [vmem:[#allocation5_spill] sm:$0xff] %v2648_v5  ;;  %v2660_v7 = vld [vmem:[%s3943_s3 + $0xe8] sm:$0xff]  ;;  %v2677_v10 = vld [vmem:[%s3943_s3 + $0xd8] sm:$0xff] }
   0x3   :  { %2114 = vmatprep.mubr.msk.f32.mxu1 %vm71_vm1, %v41_v2  ;;  %v2667_v8 = vld [vmem:[%s3943_s3 + $0xe0] sm:$0xff]  ;;  %v42_v9 = vld [vmem:[%s3942_s1 + $0x8] sm:$0xff]  ;;  %v2683_v11 = vld [vmem:[%s3943_s3 + $0xd0] sm:$0xff]  ;;  %v54_v63 = vshrl.u32 %v53_v62, 7 }
   0x4   :  { %1902 = vmatprep.subr.msk.mxu0 %vm96_vm0, %v70_v3  ;;  %v2689_v12 = vld [vmem:[%s3943_s3 + $0xc8] sm:$0xff]  ;;  %v2696_v13 = vld [vmem:[%s3943_s3 + $0xc0] sm:$0xff]  ;;  %v2703_v14 = vld [vmem:[%s3942_s1 + $0x10] sm:$0xff] }
   0x5   :  { %1903 = vmatpush1.msk.msra.mxu0 %vm96_vm0, %v49_v0  ;;  %v2708_v15 = vld [vmem:[%s3943_s3 + $0xb8] sm:$0xff]  ;;  %v2714_v16 = vld [vmem:[%s3943_s3 + $0xb0] sm:$0xff]  ;;  %v2720_v17 = vld [vmem:[%s3943_s3 + $0xa8] sm:$0xff]  ;;  %v55_v0 = vsub.s32 0, %v54_v63  ;;  %v59_v4 = vsub.s32 1, %v54_v63 }
   0x6   :  { %1904 = vmatmul.mubr.msk.f32.vlgmr.msra.gmra.mxu0 %vm71_vm1, %v41_v2  ;;  %406 = vmatprep.subr.mxu0 %v2648_v5  ;;  %v50_v18 = vld [vmem:[%s3941_s2 + $0x8] sm:$0xf]  ;;  %v2731_v19 = vld [vmem:[%s3943_s3 + $0xa0] sm:$0xff]  ;;  %v2738_v20 = vld [vmem:[%s3942_s1 + $0x18] sm:$0xff] }
   0x7   :  { %407 = vmatpush1.msra.mxu0 %v2654_v6  ;;  %173 = vmatprep.mubr.f32.mxu0 %v3952_v1  ;;  %v2743_v21 = vld [vmem:[%s3943_s3 + $0x98] sm:$0xff]  ;;  %v2749_v22 = vld [vmem:[%s3943_s3 + $0x90] sm:$0xff]  ;;  %v2756_v23 = vld [vmem:[%s3943_s3 + $0x88] sm:$0xff] }
   0x8   :  { %408 = vmatprep.subr.mxu0 %v2660_v7  ;;  %2112 = vmatprep.subr.msk.mxu1 %vm96_vm0, %v50_v18  ;;  %v2765_v24 = vld [vmem:[%s3943_s3 + $0x80] sm:$0xff]  ;;  %v2777_v26 = vld [vmem:[%s3943_s3 + $0x78] sm:$0xff]  ;;  %v2783_v27 = vld [vmem:[%s3943_s3 + $0x70] sm:$0xff] }
   0x9   :  { %409 = vmatpush1.msra.mxu0 %v2667_v8  ;;  %2113 = vmatpush3.msk.msra.mxu1 %vm96_vm0, %v50_v18  ;;  %v2772_v25 = vld [vmem:[%s3942_s1 + $0x20] sm:$0xff]  ;;  %v2790_v28 = vld [vmem:[%s3943_s3 + $0x68] sm:$0xff]  ;;  %v2796_v29 = vld [vmem:[%s3944_s4 + $0x78] sm:$0xff] }
   0xa   :  { %1905 = vmatmul.mubr.msk.f32.gmra.mxu0 %vm71_vm1, %v42_v9  ;;  %410 = vmatprep.subr.mxu0 %v2677_v10  ;;  %v2804_v30 = vld [vmem:[%s3943_s3 + $0x60] sm:$0xff]  ;;  %v2811_v31 = vld [vmem:[%s3942_s1 + $0x28] sm:$0xff]  ;;  %v2816_v32 = vld [vmem:[%s3943_s3 + $0x58] sm:$0xff] }
   0xb   :  { %411 = vmatpush1.msra.mxu0 %v2683_v11  ;;  %179 = vmatprep.mubr.f32.mxu0 %v3952_v1  ;;  %v2822_v33 = vld [vmem:[%s3943_s3 + $0x50] sm:$0xff]  ;;  %v2829_v34 = vld [vmem:[%s3943_s3 + $0x48] sm:$0xff]  ;;  %v2843_v36 = vld [vmem:[%s3943_s3 + $0x40] sm:$0xff] }
   0xc   :  { %412 = vmatprep.subr.mxu0 %v2689_v12  ;;  %2126 = vmatprep.subr.mxu1 %v3952_v1  ;;  %v2835_v35 = vld [vmem:[%s3944_s4 + $0x70] sm:$0xff]  ;;  %v2853_v38 = vld [vmem:[%s3943_s3 + $0x38] sm:$0xff]  ;;  %v2866_v40 = vld [vmem:[%s3943_s3 + $0x28] sm:$0xff] }
   0xd   :  { %413 = vmatpush1.msra.mxu0 %v2696_v13  ;;  %2115 = vmatmul.mubr.msk.f32.vlgmr.msra.gmra.mxu1 %vm71_vm1, %v42_v9  ;;  %v47_v37 = vld [vmem:[%s3942_s1 + $0x30] sm:$0xff]  ;;  %v2872_v41 = vld [vmem:[%s3944_s4 + $0x68] sm:$0xff]  ;;  %v2879_v42 = vld [vmem:[%s3943_s3 + $0x20] sm:$0xff] }
   0xe   :  { %1906 = vmatmul.mubr.msk.f32.gmra.mxu0 %vm71_vm1, %v2703_v14  ;;  %414 = vmatprep.subr.mxu0 %v2708_v15  ;;  %v2859_v39 = vld [vmem:[%s3943_s3 + $0x30] sm:$0xff]  ;;  %v48_v43 = vld [vmem:[%s3942_s1 + $0x38] sm:$0xff]  ;;  %v2902_v46 = vld [vmem:[%s3943_s3 + $0x8] sm:$0xff] }
   0xf   :  { %415 = vmatpush1.msra.mxu0 %v2714_v16  ;;  %185 = vmatprep.mubr.f32.mxu0 %v3952_v1  ;;  %v2889_v44 = vld [vmem:[%s3943_s3 + $0x18] sm:$0xff]  ;;  %v2895_v45 = vld [vmem:[%s3943_s3 + $0x10] sm:$0xff]  ;;  %3974 = vst [vmem:[#allocation7_spill] sm:$0xff] %v2902_v46  ;;  %v2908_v47 = vld [vmem:[%s3944_s4 + $0x60] sm:$0xff] }
  0x10   :  { %416 = vmatprep.subr.mxu0 %v2720_v17  ;;  %2127 = vmatpush3.msra.mxu1 %v2796_v29  ;;  %3973 = vst [vmem:[#allocation6_spill] sm:$0xff] %v2895_v45  ;;  %v2915_v48 = vld [vmem:[%s3943_s3] sm:$0xff]  ;;  %v2922_v49 = vld [vmem:[%s3944_s4 + $0x58] sm:$0xff]  ;;  %v2931_v50 = vld [vmem:[%s3944_s4 + $0x50] sm:$0xff] }
  0x11   :  { %417 = vmatpush1.msra.mxu0 %v2731_v19  ;;  %2128 = vmatprep.subr.mxu1 %v3952_v1  ;;  %3975 = vst [vmem:[#allocation8_spill] sm:$0xff] %v2915_v48  ;;  %v394_v51 = vld [vmem:[%s3945_s0] sm:$0xff]  ;;  %v2942_v52 = vld [vmem:[%s3944_s4 + $0x48] sm:$0xff]  ;;  %v2962_v54 = vld [vmem:[%s3944_s4 + $0x38] sm:$0xff] }
  0x12   :  { %1907 = vmatmul.mubr.msk.f32.gmra.mxu0 %vm71_vm1, %v2738_v20  ;;  %418 = vmatprep.subr.mxu0 %v2743_v21  ;;  %v2951_v53 = vld [vmem:[%s3944_s4 + $0x40] sm:$0xff]  ;;  %v2971_v55 = vld [vmem:[%s3944_s4 + $0x30] sm:$0xff]  ;;  %v2981_v56 = vld [vmem:[%s3944_s4 + $0x28] sm:$0xff] }
  0x13   :  { %419 = vmatpush1.msra.mxu0 %v2749_v22  ;;  %191 = vmatprep.mubr.f32.mxu0 %v3952_v1  ;;  %v2990_v57 = vld [vmem:[%s3944_s4 + $0x20] sm:$0xff]  ;;  %v3000_v58 = vld [vmem:[%s3944_s4 + $0x18] sm:$0xff]  ;;  %v3009_v59 = vld [vmem:[%s3944_s4 + $0x10] sm:$0xff] }
  0x14   :  { %420 = vmatprep.subr.mxu0 %v2756_v23  ;;  %2129 = vmatpush3.msra.mxu1 %v2835_v35  ;;  %v3018_v60 = vld [vmem:[%s3944_s4 + $0x8] sm:$0xff]  ;;  %v3027_v61 = vld [vmem:[%s3944_s4] sm:$0xff] }
  0x15   :  { %421 = vmatpush1.msra.mxu0 %v2765_v24  ;;  %2130 = vmatprep.subr.mxu1 %v3952_v1  ;;  %3976 = vst [vmem:[#allocation9_spill] sm:$0xff] %v3018_v60  ;;  %3977 = vst [vmem:[#allocation10_spill] sm:$0xff] %v3027_v61  ;;  %v51_v2 = vld [vmem:[%s3946_s5] sm:$0x7] }
  0x16   :  { %1908 = vmatmul.mubr.msk.f32.gmra.mxu0 %vm71_vm1, %v2772_v25  ;;  %422 = vmatprep.subr.mxu0 %v2777_v26 }
  0x17   :  { %423 = vmatpush1.msra.mxu0 %v2783_v27  ;;  %197 = vmatprep.mubr.f32.mxu0 %v3952_v1 }
  0x18   :  { %424 = vmatprep.subr.mxu0 %v2790_v28  ;;  %2131 = vmatpush3.msra.mxu1 %v2872_v41 }
  0x19   :  { %425 = vmatpush1.msra.mxu0 %v2804_v30  ;;  %2132 = vmatprep.subr.mxu1 %v3952_v1 }
  0x1a   :  { %1909 = vmatmul.mubr.msk.f32.gmra.mxu0 %vm71_vm1, %v2811_v31  ;;  %426 = vmatprep.subr.mxu0 %v2816_v32 }
  0x1b   :  { %427 = vmatpush1.msra.mxu0 %v2822_v33  ;;  %203 = vmatprep.mubr.f32.mxu0 %v3952_v1 }
  0x1c   :  { %428 = vmatprep.subr.mxu0 %v2829_v34  ;;  %2133 = vmatpush3.msra.mxu1 %v2908_v47 }
  0x1d   :  { %429 = vmatpush1.msra.mxu0 %v2843_v36  ;;  %2134 = vmatprep.subr.mxu1 %v3952_v1 }
  0x1e   :  { %1910 = vmatmul.mubr.msk.f32.gmra.mxu0 %vm71_vm1, %v47_v37  ;;  %430 = vmatprep.subr.mxu0 %v2853_v38 }
  0x1f   :  { %431 = vmatpush1.msra.mxu0 %v2859_v39  ;;  %209 = vmatprep.mubr.f32.mxu0 %v3952_v1 }
  0x20   :  { %432 = vmatprep.subr.mxu0 %v2866_v40  ;;  %2135 = vmatpush3.msra.mxu1 %v2922_v49 }
  0x21   :  { %433 = vmatpush1.msra.mxu0 %v2879_v42  ;;  %2136 = vmatprep.subr.mxu1 %v3952_v1 }
  0x22   :  { %1911 = vmatmul.mubr.msk.f32.gmra.mxu0 %vm71_vm1, %v48_v43  ;;  %434 = vmatprep.subr.mxu0 %v2889_v44 }
  0x23   :  { %435 = vmatpush1.msra.mxu0 %v2895_v45  ;;  %470 = vmatprep.mubr.f32.mxu0 %v3952_v1 }
  0x24   :  { %436 = vmatprep.subr.mxu0 %v2902_v46  ;;  %2117 = vmatprep.mubr.msk.f32.mxu1 %vm71_vm1, %v2703_v14  ;;  %v56_v14 = vrot.slane %v51_v2, %v55_v0 }
  0x25   :  { %437 = vmatpush1.msra.mxu0 %v2915_v48  ;;  %2137 = vmatpush3.msra.mxu1 %v2931_v50 }
  0x26   :  { %471 = vmatmul.mubr.f32.vlgmr.msra.gmra.mxu0 %v3952_v1  ;;  %396 = vperm.xlu0 %2444, %v394_v51   ;;  %v63_v51 = vsub.s32 2, %v54_v63 }
  0x27   :  { %2138 = vmatprep.subr.mxu1 %v3952_v1  ;;  %2118 = vmatmul.mubr.msk.f32.gmra.mxu1 %vm71_vm1, %v2738_v20  ;;  %v60_v20 = vrot.slane %v51_v2, %v59_v4 }
  0x28   :  { %2139 = vmatpush3.msra.mxu1 %v2942_v52  ;;  %2120 = vmatprep.mubr.msk.f32.mxu1 %vm71_vm1, %v2772_v25 }
  0x29   :  { %2140 = vmatprep.subr.mxu1 %v3952_v1  ;;  %583 = vmatprep.subr.mxu0 %v2648_v5 }
  0x2a   :  { %2141 = vmatpush3.msra.mxu1 %v2951_v53  ;;  %584 = vmatpush1.msra.mxu0 %v2654_v6 }
  0x2b   :  { %2142 = vmatprep.subr.mxu1 %v3952_v1  ;;  %2121 = vmatmul.mubr.msk.f32.gmra.mxu1 %vm71_vm1, %v2811_v31 }
  0x2c   :  { %2143 = vmatpush3.msra.mxu1 %v2962_v54  ;;  %2123 = vmatprep.mubr.msk.f32.mxu1 %vm71_vm1, %v47_v37 }
  0x2d   :  { %2144 = vmatprep.subr.mxu1 %v3952_v1  ;;  %585 = vmatprep.subr.mxu0 %v2660_v7 }
  0x2e   :  { %2145 = vmatpush3.msra.mxu1 %v2971_v55  ;;  %586 = vmatpush1.msra.mxu0 %v2667_v8 }
  0x2f   :  { %2146 = vmatprep.subr.mxu1 %v3952_v1  ;;  %2124 = vmatmul.mubr.msk.f32.gmra.mxu1 %vm71_vm1, %v48_v43 }
  0x30   :  { %2147 = vmatpush3.msra.mxu1 %v2981_v56  ;;  %2158 = vmatprep.mubr.msk.f32.mxu1 %vm2581_vm2, %v3952_v1 }
  0x31   :  { %2148 = vmatprep.subr.mxu1 %v3952_v1  ;;  %587 = vmatprep.subr.mxu0 %v2677_v10 }
  0x32   :  { %2149 = vmatpush3.msra.mxu1 %v2990_v57  ;;  %588 = vmatpush1.msra.mxu0 %v2683_v11 }
  0x33   :  { %2150 = vmatprep.subr.mxu1 %v3952_v1  ;;  %589 = vmatprep.subr.mxu0 %v2689_v12 }
  0x34   :  { %2151 = vmatpush3.msra.mxu1 %v3000_v58  ;;  %590 = vmatpush1.msra.mxu0 %v2696_v13 }
  0x35   :  { %2152 = vmatprep.subr.mxu1 %v3952_v1  ;;  %591 = vmatprep.subr.mxu0 %v2708_v15 }
  0x36   :  { %2153 = vmatpush3.msra.mxu1 %v3009_v59  ;;  %592 = vmatpush1.msra.mxu0 %v2714_v16 }
  0x37   :  { %2154 = vmatprep.subr.mxu1 %v3952_v1  ;;  %593 = vmatprep.subr.mxu0 %v2720_v17 }
  0x38   :  { %2155 = vmatpush3.msra.mxu1 %v3018_v60  ;;  %594 = vmatpush1.msra.mxu0 %v2731_v19 }
  0x39   :  { %2156 = vmatprep.subr.mxu1 %v3952_v1  ;;  %595 = vmatprep.subr.mxu0 %v2743_v21 }
  0x3a   :  { %2157 = vmatpush3.msra.mxu1 %v3027_v61  ;;  %596 = vmatpush1.msra.mxu0 %v2749_v22 }
  0x3b   :  { %2159 = vmatmul.mubr.f32.vlgmr.msra.gmra.mxu1 %v3952_v1  ;;  %2161 = vmatprep.subr.mxu1 %v3952_v1 }
  0x3c   :  { %2162 = vmatpush3.msra.mxu1 %v2796_v29  ;;  %597 = vmatprep.subr.mxu0 %v2756_v23 }
  0x3d   :  { %2163 = vmatprep.subr.mxu1 %v3952_v1  ;;  %598 = vmatpush1.msra.mxu0 %v2765_v24 }
  0x3e   :  { %2164 = vmatpush3.msra.mxu1 %v2835_v35  ;;  %599 = vmatprep.subr.mxu0 %v2777_v26 }
  0x3f   :  { %2165 = vmatprep.subr.mxu1 %v3952_v1  ;;  %600 = vmatpush1.msra.mxu0 %v2783_v27 }
  0x40   :  { %2166 = vmatpush3.msra.mxu1 %v2872_v41  ;;  %601 = vmatprep.subr.mxu0 %v2790_v28 }
  0x41   :  { %2167 = vmatprep.subr.mxu1 %v3952_v1  ;;  %602 = vmatpush1.msra.mxu0 %v2804_v30 }
  0x42   :  { %2168 = vmatpush3.msra.mxu1 %v2908_v47  ;;  %603 = vmatprep.subr.mxu0 %v2816_v32 }
  0x43   :  { %2169 = vmatprep.subr.mxu1 %v3952_v1  ;;  %604 = vmatpush1.msra.mxu0 %v2822_v33 }
  0x44   :  { %2170 = vmatpush3.msra.mxu1 %v2922_v49  ;;  %605 = vmatprep.subr.mxu0 %v2829_v34 }
  0x45   :  { %2171 = vmatprep.subr.mxu1 %v3952_v1  ;;  %606 = vmatpush1.msra.mxu0 %v2843_v36 }
  0x46   :  { %2172 = vmatpush3.msra.mxu1 %v2931_v50  ;;  %607 = vmatprep.subr.mxu0 %v2853_v38 }
  0x47   :  { %2173 = vmatprep.subr.mxu1 %v3952_v1  ;;  %608 = vmatpush1.msra.mxu0 %v2859_v39 }
  0x48   :  { %2174 = vmatpush3.msra.mxu1 %v2942_v52  ;;  %609 = vmatprep.subr.mxu0 %v2866_v40 }
  0x49   :  { %2175 = vmatprep.subr.mxu1 %v3952_v1  ;;  %610 = vmatpush1.msra.mxu0 %v2879_v42 }
  0x4a   :  { %2176 = vmatpush3.msra.mxu1 %v2951_v53  ;;  %611 = vmatprep.subr.mxu0 %v2889_v44 }
  0x4b   :  { %2177 = vmatprep.subr.mxu1 %v3952_v1  ;;  %612 = vmatpush1.msra.mxu0 %v2895_v45 }
  0x4c   :  { %2178 = vmatpush3.msra.mxu1 %v2962_v54  ;;  %613 = vmatprep.subr.mxu0 %v2902_v46 }
  0x4d   :  { %2179 = vmatprep.subr.mxu1 %v3952_v1  ;;  %614 = vmatpush1.msra.mxu0 %v2915_v48  ;;  %v64_v48 = vrot.slane %v51_v2, %v63_v51 }
  0x4e   :  { %2180 = vmatpush3.msra.mxu1 %v2971_v55  ;;  %647 = vmatprep.mubr.f32.mxu0 %v3952_v1 }
  0x4f   :  { %2181 = vmatprep.subr.mxu1 %v3952_v1  ;;  %2193 = vmatprep.mubr.msk.f32.mxu1 %vm2581_vm2, %v3952_v1 }
  0x50   :  { %2182 = vmatpush3.msra.mxu1 %v2981_v56  ;;  %755 = vmatprep.subr.mxu0 %v2648_v5 }
  0x51   :  { %2183 = vmatprep.subr.mxu1 %v3952_v1 }
  0x52   :  { %2184 = vmatpush3.msra.mxu1 %v2990_v57 }
  0x53   :  { %2185 = vmatprep.subr.mxu1 %v3952_v1 }
  0x54   :  { %2186 = vmatpush3.msra.mxu1 %v3000_v58 }
  0x55   :  { %2187 = vmatprep.subr.mxu1 %v3952_v1 }
  0x56   :  { %2188 = vmatpush3.msra.mxu1 %v3009_v59 }
  0x57   :  { %2189 = vmatprep.subr.mxu1 %v3952_v1 }
  0x58   :  { %2190 = vmatpush3.msra.mxu1 %v3018_v60 }
  0x59   :  { %2191 = vmatprep.subr.mxu1 %v3952_v1 }
  0x5a   :  { %2192 = vmatpush3.msra.mxu1 %v3027_v61 }
  0x5b   :  { %2196 = vmatprep.subr.mxu1 %v3952_v1 }
  0xc6   :  { %v169_v3 = vpop.f32.mrf.mxu0 }
  0xc8   :  { %v171_v9 = vpop.f32.mrf.mxu0 }
  0xca   :  { %v175_v18 = vpop.f32.mrf.mxu0 }
  0xcb   :  { %v3095_v25 = vadd.f32 %v175_v18, %v56_v14 }
  0xcc   :  { %v177_v31 = vpop.f32.mrf.mxu0 }
  0xcd   :  { %3978 = vst [vmem:[#allocation11_spill] sm:$0xff] %v3095_v25  ;;  %v3097_v37 = vadd.f32 %v177_v31, %v60_v20  ;;  %v2116_v4 = vpop.f32.mrf.mxu1 }
  0xce   :  { %v181_v43 = vpop.f32.mrf.mxu0  ;;  %v3107_v25 = vadd.f32 %v2116_v4, %v64_v48 }
  0xcf   :  { %3979 = vst [vmem:[#allocation12_spill] sm:$0xff] %v3097_v37  ;;  %v3099_v1 = vadd.f32 %v181_v43, %v56_v14 }
  0xd0   :  { %v183_v62 = vpop.f32.mrf.mxu0  ;;  %3984 = vst [vmem:[#allocation17_spill] sm:$0xff] %v3107_v25 }
  0xd1   :  { %3980 = vst [vmem:[#allocation13_spill] sm:$0xff] %v3099_v1  ;;  %v3101_v5 = vadd.f32 %v183_v62, %v60_v20 }
  0xd2   :  { %v187_v61 = vpop.f32.mrf.mxu0 }
  0xd3   :  { %3981 = vst [vmem:[#allocation14_spill] sm:$0xff] %v3101_v5  ;;  %v3103_v46 = vadd.f32 %v187_v61, %v56_v14 }
  0xd4   :  { %v189_v60 = vpop.f32.mrf.mxu0 }
  0xd5   :  { %3982 = vst [vmem:[#allocation15_spill] sm:$0xff] %v3103_v46  ;;  %v3105_v0 = vadd.f32 %v189_v60, %v60_v20 }
  0xd6   :  { %v193_v18 = vpop.f32.mrf.mxu0 }
  0xd7   :  { %3983 = vst [vmem:[#allocation16_spill] sm:$0xff] %v3105_v0  ;;  %v3109_v31 = vadd.f32 %v193_v18, %v56_v14 }
  0xd8   :  { %v195_v37 = vpop.f32.mrf.mxu0 }
  0xd9   :  { %3985 = vst [vmem:[#allocation18_spill] sm:$0xff] %v3109_v31  ;;  %v3111_v63 = vadd.f32 %v195_v37, %v60_v20  ;;  %v170_v31 = vadd.f32 %v169_v3, %v56_v14 }
  0xda   :  { %v199_v43 = vpop.f32.mrf.mxu0 }
  0xdb   :  { %3986 = vst [vmem:[#allocation19_spill] sm:$0xff] %v3111_v63  ;;  %v3113_v1 = vadd.f32 %v199_v43, %v56_v14  ;;  %v282_v43 = vpop.f32.mrf.mxu1 }
  0xdc   :  { %v201_v62 = vpop.f32.mrf.mxu0 }
  0xdd   :  { %3987 = vst [vmem:[#allocation20_spill] sm:$0xff] %v3113_v1  ;;  %v3115_v5 = vadd.f32 %v201_v62, %v60_v20 }
  0xde   :  { %v205_v61 = vpop.f32.mrf.mxu0 }
  0xdf   :  { %3988 = vst [vmem:[#allocation21_spill] sm:$0xff] %v3115_v5  ;;  %v3117_v2 = vadd.f32 %v205_v61, %v56_v14  ;;  %v172_v61 = vadd.f32 %v171_v9, %v60_v20 }
  0xe0   :  { %v207_v60 = vpop.f32.mrf.mxu0 }
  0xe1   :  { %3989 = vst [vmem:[#allocation22_spill] sm:$0xff] %v3117_v2  ;;  %v3119_v51 = vadd.f32 %v207_v60, %v60_v20 }
  0xe2   :  { %v211_v0 = vpop.f32.mrf.mxu0 }
  0xe3   :  { %3990 = vst [vmem:[#allocation23_spill] sm:$0xff] %v3119_v51  ;;  %v3121_v4 = vadd.f32 %v211_v0, %v56_v14 }
  0xe4   :  { %v213_v18 = vpop.f32.mrf.mxu0 }
  0xe5   :  { %3991 = vst [vmem:[#allocation24_spill] sm:$0xff] %v3121_v4  ;;  %v3123_v46 = vadd.f32 %v213_v18, %v60_v20 }
  0xe6   :  { %v472_v37 = vpop.f32.mrf.mxu0 }
  0xe7   :  { %3992 = vst [vmem:[#allocation25_spill] sm:$0xff] %v3123_v46  ;;  %v477_v63 = vadd.f32 %v472_v37, %v170_v31  ;;  %v2119_v25 = vpop.f32.mrf.mxu1 }
  0xe8   :  { %v474_v62 = vpop.f32.mrf.mxu0  ;;  %v3125_v5 = vadd.f32 %v2119_v25, %v64_v48 }
  0xe9   :  { %v1921_v1 = vmul.f32 -1.442695, %v477_v63  ;;  %v292_v2 = vpop.f32.mrf.mxu1  ;;  %v484_v51 = vadd.f32 %v474_v62, %v172_v61  ;;  %v3140_v62 = vld [vmem:[%s3947_s6] ss:$0 sm:$0xff] }
  0xea   :  { %3993 = vst [vmem:[#allocation26_spill] sm:$0xff] %v3125_v5  ;;  %v3127_v60 = vadd.f32 %v292_v2, %v64_v48 }
  0xeb   :  { %2446 = vpow2.f32 %v1921_v1  ;;  %v2122_v0 = vpop.f32.mrf.mxu1  ;;  %v1922_v18 = vmul.f32 -1.442695, %v484_v51 }
  0xec   :  { %3994 = vst [vmem:[#allocation27_spill] sm:$0xff] %v3127_v60  ;;  %v3129_v4 = vadd.f32 %v2122_v0, %v64_v48 }
  0xed   :  { %v302_v3 = vpop.f32.mrf.mxu1  ;;  %2448 = vpow2.f32 %v1922_v18 }
  0xee   :  { %3995 = vst [vmem:[#allocation28_spill] sm:$0xff] %v3129_v4  ;;  %v3131_v14 = vadd.f32 %v302_v3, %v64_v48  ;;  %v283_v3 = vadd.f32 %v282_v43, %v64_v48  ;;  %v4002_v43 = vld [vmem:[#allocation8_spill] sm:$0xff] }
  0xef   :  { %v2125_v31 = vpop.f32.mrf.mxu1 }
  0xf0   :  { %3996 = vst [vmem:[#allocation29_spill] sm:$0xff] %v3131_v14  ;;  %v3133_v37 = vadd.f32 %v2125_v31, %v64_v48 }
  0xf1   :  { %v312_v63 = vpop.f32.mrf.mxu1 }
  0xf2   :  { %3997 = vst [vmem:[#allocation30_spill] sm:$0xff] %v3133_v37  ;;  %v3135_v46 = vadd.f32 %v312_v63, %v64_v48  ;;  %v3999_v48 = vmov 0.0  }
  0xf4   :  { %3998 = vst [vmem:[#allocation31_spill] sm:$0xff] %v3135_v46 }
  0xf8   :  { %v2447_v9 = vpop.eup %2446 }
  0xf9   :  { %v481_v1 = vadd.f32 1.0, %v2447_v9  ;;  %v3143_v9 = vpop.permute.xlu0 %396 }
  0xfa   :  { %v2449_v2 = vpop.eup %2448  ;;  %vm1924_vm3 = vcmp.gt.s32.totalorder %v3143_v9, 0  ;;  %vm1927_vm4 = vcmp.gt.s32.totalorder %v3143_v9, 1  ;;  %vm1930_vm5 = vcmp.gt.s32.totalorder %v3143_v9, 2  ;;  %vm1933_vm6 = vcmp.gt.s32.totalorder %v3143_v9, 3 }
  0xfb   :  { %2450 = vrcp.f32 %v481_v1  ;;  %v563_v20 = vpop.f32.mrf.mxu1  ;;  %v488_v61 = vadd.f32 1.0, %v2449_v2  ;;  %vm1936_vm7 = vcmp.gt.s32.totalorder %v3143_v9, 4  ;;  %vm1939_vm8 = vcmp.gt.s32.totalorder %v3143_v9, 5 }
  0xfc   :  { %v564_v51 = vadd.f32 %v3140_v62, %v563_v20  ;;  %v4004_v20 = vld [vmem:[#allocation5_spill] sm:$0xff]  ;;  %vm1942_vm9 = vcmp.gt.s32.totalorder %v3143_v9, 6  ;;  %vm1945_vm10 = vcmp.gt.s32.totalorder %v3143_v9, 7 }
  0xfd   :  { %v2160_v25 = vpop.f32.mrf.mxu1  ;;  %2452 = vrcp.f32 %v488_v61 }
 0x108   :  { %v2451_v0 = vpop.eup %2450 }
 0x109   :  { %v567_v31 = vmul.f32 %v2451_v0, %v564_v51  ;;  %v4005_v0 = vld [vmem:[#allocation11_spill] sm:$0xff] }
 0x10a   :  { %v2453_v18 = vpop.eup %2452 }
 0x10b   :  { %v568_v63 = vadd.f32 %v567_v31, %v283_v3  ;;  %v570_v1 = vsub.f32 1.0, %v2453_v18  ;;  %v572_v46 = vmul.f32 0.0, %v2453_v18 }
 0x10d   :  { %2454 = vtanh.f32 %v568_v63 }
 0x11a   :  { %v2455_v25 = vpop.eup %2454 }
 0x11b   :  { %v571_v37 = vmul.f32 %v2455_v25, %v570_v1  ;;  %v4006_v1 = vld [vmem:[#allocation12_spill] sm:$0xff] }
 0x11d   :  { %v573_v4 = vadd.f32 %v572_v46, %v571_v37  ;;  %v4000_v46 = vld [vmem:[#allocation9_spill] sm:$0xff]  ;;  %v4003_v37 = vld [vmem:[#allocation10_spill] sm:$0xff] }
 0x11f   :  { %1948 = vmatmul.mubr.msk.f32.vlgmr.msra.gmra.mxu0 %vm1924_vm3, %v573_v4  ;;  %2194 = vmatmul.mubr.msk.f32.vlgmr.msra.gmra.mxu1 %vm1924_vm3, %v573_v4  ;;  %v3146_v2 = vsel %vm1924_vm3, %v573_v4, 0.0  ;;  %v4001_v4 = vld [vmem:[#allocation7_spill] sm:$0xff] }
 0x120   :  { %756 = vmatpush1.msra.mxu0 %v2654_v6  ;;  %2197 = vmatpush3.msra.mxu1 %v2796_v29 }
 0x121   :  { %757 = vmatprep.subr.mxu0 %v2660_v7  ;;  %2198 = vmatprep.subr.mxu1 %v3999_v48 }
 0x122   :  { %758 = vmatpush1.msra.mxu0 %v2667_v8  ;;  %2199 = vmatpush3.msra.mxu1 %v2835_v35 }
 0x123   :  { %759 = vmatprep.subr.mxu0 %v2677_v10  ;;  %2200 = vmatprep.subr.mxu1 %v3999_v48 }
 0x124   :  { %760 = vmatpush1.msra.mxu0 %v2683_v11  ;;  %2201 = vmatpush3.msra.mxu1 %v2872_v41 }
 0x125   :  { %761 = vmatprep.subr.mxu0 %v2689_v12  ;;  %2202 = vmatprep.subr.mxu1 %v3999_v48 }
 0x126   :  { %762 = vmatpush1.msra.mxu0 %v2696_v13  ;;  %2203 = vmatpush3.msra.mxu1 %v2908_v47 }
 0x127   :  { %763 = vmatprep.subr.mxu0 %v2708_v15  ;;  %2204 = vmatprep.subr.mxu1 %v3999_v48 }
 0x128   :  { %764 = vmatpush1.msra.mxu0 %v2714_v16  ;;  %2205 = vmatpush3.msra.mxu1 %v2922_v49 }
 0x129   :  { %765 = vmatprep.subr.mxu0 %v2720_v17  ;;  %2206 = vmatprep.subr.mxu1 %v3999_v48 }
 0x12a   :  { %766 = vmatpush1.msra.mxu0 %v2731_v19  ;;  %2207 = vmatpush3.msra.mxu1 %v2931_v50 }
 0x12b   :  { %767 = vmatprep.subr.mxu0 %v2743_v21  ;;  %2208 = vmatprep.subr.mxu1 %v3999_v48 }
 0x12c   :  { %768 = vmatpush1.msra.mxu0 %v2749_v22  ;;  %2209 = vmatpush3.msra.mxu1 %v2942_v52 }
 0x12d   :  { %769 = vmatprep.subr.mxu0 %v2756_v23  ;;  %2210 = vmatprep.subr.mxu1 %v3999_v48 }
 0x12e   :  { %770 = vmatpush1.msra.mxu0 %v2765_v24  ;;  %2211 = vmatpush3.msra.mxu1 %v2951_v53 }
 0x12f   :  { %771 = vmatprep.subr.mxu0 %v2777_v26  ;;  %2212 = vmatprep.subr.mxu1 %v3999_v48 }
 0x130   :  { %772 = vmatpush1.msra.mxu0 %v2783_v27  ;;  %2213 = vmatpush3.msra.mxu1 %v2962_v54 }
 0x131   :  { %773 = vmatprep.subr.mxu0 %v2790_v28  ;;  %2214 = vmatprep.subr.mxu1 %v3999_v48 }
 0x132   :  { %774 = vmatpush1.msra.mxu0 %v2804_v30  ;;  %2215 = vmatpush3.msra.mxu1 %v2971_v55 }
 0x133   :  { %775 = vmatprep.subr.mxu0 %v2816_v32  ;;  %2216 = vmatprep.subr.mxu1 %v3999_v48 }
 0x134   :  { %776 = vmatpush1.msra.mxu0 %v2822_v33  ;;  %2217 = vmatpush3.msra.mxu1 %v2981_v56 }
 0x135   :  { %777 = vmatprep.subr.mxu0 %v2829_v34  ;;  %2218 = vmatprep.subr.mxu1 %v3999_v48 }
 0x136   :  { %778 = vmatpush1.msra.mxu0 %v2843_v36  ;;  %2219 = vmatpush3.msra.mxu1 %v2990_v57 }
 0x137   :  { %779 = vmatprep.subr.mxu0 %v2853_v38  ;;  %2220 = vmatprep.subr.mxu1 %v3999_v48 }
 0x138   :  { %780 = vmatpush1.msra.mxu0 %v2859_v39  ;;  %2221 = vmatpush3.msra.mxu1 %v3000_v58 }
 0x139   :  { %781 = vmatprep.subr.mxu0 %v2866_v40  ;;  %2222 = vmatprep.subr.mxu1 %v3999_v48 }
 0x13a   :  { %782 = vmatpush1.msra.mxu0 %v2879_v42  ;;  %2223 = vmatpush3.msra.mxu1 %v3009_v59 }
 0x13b   :  { %783 = vmatprep.subr.mxu0 %v2889_v44  ;;  %2224 = vmatprep.subr.mxu1 %v3999_v48 }
 0x13c   :  { %784 = vmatpush1.msra.mxu0 %v2895_v45  ;;  %2225 = vmatpush3.msra.mxu1 %v4000_v46 }
 0x13d   :  { %785 = vmatprep.subr.mxu0 %v4001_v4  ;;  %2226 = vmatprep.subr.mxu1 %v3999_v48 }
 0x13e   :  { %786 = vmatpush1.msra.mxu0 %v4002_v43  ;;  %819 = vmatprep.mubr.f32.mxu0 %v3999_v48 }
 0x13f   :  { %2227 = vmatpush3.msra.mxu1 %v4003_v37  ;;  %2228 = vmatprep.mubr.msk.f32.mxu1 %vm2581_vm2, %v3999_v48 }
 0x140   :  { %927 = vmatprep.subr.mxu0 %v4004_v20  ;;  %2231 = vmatprep.subr.mxu1 %v3999_v48 }
 0x1df   :  { %v649_v61 = vpop.f32.mrf.mxu0  ;;  %v734_v51 = vpop.f32.mrf.mxu1 }
 0x1e0   :  { %v654_v3 = vadd.f32 %v649_v61, %v4005_v0  ;;  %v735_v20 = vadd.f32 %v3140_v62, %v734_v51  ;;  %v4007_v61 = vld [vmem:[#allocation17_spill] sm:$0xff] }
 0x1e1   :  { %v651_v31 = vpop.f32.mrf.mxu0  ;;  %v2195_v63 = vpop.f32.mrf.mxu1  ;;  %v4014_v51 = vld [vmem:[#allocation13_spill] sm:$0xff] }
 0x1e2   :  { %v1925_v18 = vmul.f32 -1.442695, %v654_v3  ;;  %v661_v25 = vadd.f32 %v651_v31, %v4006_v1 }
 0x1e4   :  { %2456 = vpow2.f32 %v1925_v18  ;;  %v1926_v14 = vmul.f32 -1.442695, %v661_v25 }
 0x1e6   :  { %2458 = vpow2.f32 %v1926_v14 }
 0x1f1   :  { %v2457_v5 = vpop.eup %2456 }
 0x1f2   :  { %v658_v60 = vadd.f32 1.0, %v2457_v5 }
 0x1f3   :  { %v2459_v37 = vpop.eup %2458 }
 0x1f4   :  { %2460 = vrcp.f32 %v658_v60  ;;  %v665_v43 = vadd.f32 1.0, %v2459_v37  ;;  %v4009_v60 = vld [vmem:[#allocation9_spill] sm:$0xff] }
 0x1f6   :  { %2462 = vrcp.f32 %v665_v43  ;;  %v4013_v43 = vld [vmem:[#allocation5_spill] sm:$0xff] }
 0x201   :  { %v2461_v4 = vpop.eup %2460 }
 0x202   :  { %v738_v46 = vmul.f32 %v2461_v4, %v735_v20  ;;  %v4012_v4 = vld [vmem:[#allocation10_spill] sm:$0xff] }
 0x203   :  { %v2463_v45 = vpop.eup %2462 }
 0x204   :  { %v739_v0 = vadd.f32 %v738_v46, %v4007_v61  ;;  %v743_v3 = vmul.f32 %v2463_v45, %v3146_v2  ;;  %v741_v31 = vsub.f32 1.0, %v2463_v45  ;;  %v4008_v45 = vld [vmem:[#allocation6_spill] sm:$0xff]  ;;  %v4011_v46 = vld [vmem:[#allocation8_spill] sm:$0xff] }
 0x206   :  { %2464 = vtanh.f32 %v739_v0 }
 0x213   :  { %v2465_v63 = vpop.eup %2464 }
 0x214   :  { %v742_v18 = vmul.f32 %v2465_v63, %v741_v31 }
 0x216   :  { %v744_v14 = vadd.f32 %v743_v3, %v742_v18  ;;  %v4015_v3 = vld [vmem:[#allocation14_spill] sm:$0xff] }
 0x218   :  { %v3222_v5 = vsel %vm1927_vm4, %v744_v14, %v3146_v2  ;;  %v4010_v2 = vld [vmem:[#allocation7_spill] sm:$0xff] }
 0x219   :  { %820 = vmatmul.mubr.f32.vlgmr.msra.gmra.mxu0 %v3222_v5  ;;  %2229 = vmatmul.mubr.f32.vlgmr.msra.gmra.mxu1 %v3222_v5 }
 0x21a   :  { %928 = vmatpush1.msra.mxu0 %v2654_v6  ;;  %2232 = vmatpush3.msra.mxu1 %v2796_v29 }
 0x21b   :  { %929 = vmatprep.subr.mxu0 %v2660_v7  ;;  %2233 = vmatprep.subr.mxu1 %v3999_v48 }
 0x21c   :  { %930 = vmatpush1.msra.mxu0 %v2667_v8  ;;  %2234 = vmatpush3.msra.mxu1 %v2835_v35 }
 0x21d   :  { %931 = vmatprep.subr.mxu0 %v2677_v10  ;;  %2235 = vmatprep.subr.mxu1 %v3999_v48 }
 0x21e   :  { %932 = vmatpush1.msra.mxu0 %v2683_v11  ;;  %2236 = vmatpush3.msra.mxu1 %v2872_v41 }
 0x21f   :  { %933 = vmatprep.subr.mxu0 %v2689_v12  ;;  %2237 = vmatprep.subr.mxu1 %v3999_v48 }
 0x220   :  { %934 = vmatpush1.msra.mxu0 %v2696_v13  ;;  %2238 = vmatpush3.msra.mxu1 %v2908_v47 }
 0x221   :  { %935 = vmatprep.subr.mxu0 %v2708_v15  ;;  %2239 = vmatprep.subr.mxu1 %v3999_v48 }
 0x222   :  { %936 = vmatpush1.msra.mxu0 %v2714_v16  ;;  %2240 = vmatpush3.msra.mxu1 %v2922_v49 }
 0x223   :  { %937 = vmatprep.subr.mxu0 %v2720_v17  ;;  %2241 = vmatprep.subr.mxu1 %v3999_v48 }
 0x224   :  { %938 = vmatpush1.msra.mxu0 %v2731_v19  ;;  %2242 = vmatpush3.msra.mxu1 %v2931_v50 }
 0x225   :  { %939 = vmatprep.subr.mxu0 %v2743_v21  ;;  %2243 = vmatprep.subr.mxu1 %v3999_v48 }
 0x226   :  { %940 = vmatpush1.msra.mxu0 %v2749_v22  ;;  %2244 = vmatpush3.msra.mxu1 %v2942_v52 }
 0x227   :  { %941 = vmatprep.subr.mxu0 %v2756_v23  ;;  %2245 = vmatprep.subr.mxu1 %v3999_v48 }
 0x228   :  { %942 = vmatpush1.msra.mxu0 %v2765_v24  ;;  %2246 = vmatpush3.msra.mxu1 %v2951_v53 }
 0x229   :  { %943 = vmatprep.subr.mxu0 %v2777_v26  ;;  %2247 = vmatprep.subr.mxu1 %v3999_v48 }
 0x22a   :  { %944 = vmatpush1.msra.mxu0 %v2783_v27  ;;  %2248 = vmatpush3.msra.mxu1 %v2962_v54 }
 0x22b   :  { %945 = vmatprep.subr.mxu0 %v2790_v28  ;;  %2249 = vmatprep.subr.mxu1 %v3999_v48 }
 0x22c   :  { %946 = vmatpush1.msra.mxu0 %v2804_v30  ;;  %2250 = vmatpush3.msra.mxu1 %v2971_v55 }
 0x22d   :  { %947 = vmatprep.subr.mxu0 %v2816_v32  ;;  %2251 = vmatprep.subr.mxu1 %v3999_v48 }
 0x22e   :  { %948 = vmatpush1.msra.mxu0 %v2822_v33  ;;  %2252 = vmatpush3.msra.mxu1 %v2981_v56 }
 0x22f   :  { %949 = vmatprep.subr.mxu0 %v2829_v34  ;;  %2253 = vmatprep.subr.mxu1 %v3999_v48 }
 0x230   :  { %950 = vmatpush1.msra.mxu0 %v2843_v36  ;;  %2254 = vmatpush3.msra.mxu1 %v2990_v57 }
 0x231   :  { %951 = vmatprep.subr.mxu0 %v2853_v38  ;;  %2255 = vmatprep.subr.mxu1 %v3999_v48 }
 0x232   :  { %952 = vmatpush1.msra.mxu0 %v2859_v39  ;;  %2256 = vmatpush3.msra.mxu1 %v3000_v58 }
 0x233   :  { %953 = vmatprep.subr.mxu0 %v2866_v40  ;;  %2257 = vmatprep.subr.mxu1 %v3999_v48 }
 0x234   :  { %954 = vmatpush1.msra.mxu0 %v2879_v42  ;;  %2258 = vmatpush3.msra.mxu1 %v3009_v59 }
 0x235   :  { %955 = vmatprep.subr.mxu0 %v2889_v44  ;;  %2259 = vmatprep.subr.mxu1 %v3999_v48 }
 0x236   :  { %956 = vmatpush1.msra.mxu0 %v4008_v45  ;;  %2260 = vmatpush3.msra.mxu1 %v4009_v60  ;;  %v4016_v45 = vld [vmem:[#allocation27_spill] sm:$0xff] }
 0x237   :  { %957 = vmatprep.subr.mxu0 %v4010_v2  ;;  %2261 = vmatprep.subr.mxu1 %v3999_v48 }
 0x238   :  { %958 = vmatpush1.msra.mxu0 %v4011_v46  ;;  %991 = vmatprep.mubr.f32.mxu0 %v3999_v48 }
 0x239   :  { %2262 = vmatpush3.msra.mxu1 %v4012_v4  ;;  %2263 = vmatprep.mubr.msk.f32.mxu1 %vm2581_vm2, %v3999_v48 }
 0x23a   :  { %1099 = vmatprep.subr.mxu0 %v4013_v43  ;;  %2266 = vmatprep.subr.mxu1 %v3999_v48 }
 0x2d9   :  { %v821_v37 = vpop.f32.mrf.mxu0  ;;  %v906_v20 = vpop.f32.mrf.mxu1 }
 0x2da   :  { %v826_v1 = vadd.f32 %v821_v37, %v4014_v51  ;;  %v907_v43 = vadd.f32 %v3140_v62, %v906_v20  ;;  %v3472_v20 = vld [vmem:[%s3944_s4 + $0x58] sm:$0xff] }
 0x2db   :  { %v2230_v25 = vpop.f32.mrf.mxu1  ;;  %v823_v0 = vpop.f32.mrf.mxu0 }
 0x2dc   :  { %v1928_v61 = vmul.f32 -1.442695, %v826_v1  ;;  %v833_v31 = vadd.f32 %v823_v0, %v4015_v3 }
 0x2de   :  { %2466 = vpow2.f32 %v1928_v61  ;;  %v1929_v63 = vmul.f32 -1.442695, %v833_v31 }
 0x2e0   :  { %2468 = vpow2.f32 %v1929_v63  ;;  %v3478_v63 = vld [vmem:[%s3943_s3 + $0xa8] sm:$0xff] }
 0x2eb   :  { %v2467_v18 = vpop.eup %2466 }
 0x2ec   :  { %v830_v14 = vadd.f32 1.0, %v2467_v18  ;;  %v3485_v18 = vld [vmem:[%s3943_s3 + $0xa0] sm:$0xff] }
 0x2ed   :  { %v2469_v4 = vpop.eup %2468 }
 0x2ee   :  { %2470 = vrcp.f32 %v830_v14  ;;  %v837_v46 = vadd.f32 1.0, %v2469_v4  ;;  %v3466_v4 = vld [vmem:[%s3943_s3 + $0xb0] sm:$0xff] }
 0x2ef   :  { %v3491_v14 = vld [vmem:[%s3944_s4 + $0x50] sm:$0xff] }
 0x2f0   :  { %2472 = vrcp.f32 %v837_v46  ;;  %v3459_v46 = vld [vmem:[%s3943_s3 + $0xb8] sm:$0xff] }
 0x2fb   :  { %v2471_v2 = vpop.eup %2470 }
 0x2fc   :  { %v910_v60 = vmul.f32 %v2471_v2, %v907_v43  ;;  %v3453_v2 = vld [vmem:[%s3944_s4 + $0x60] sm:$0xff]  ;;  %v3497_v43 = vld [vmem:[%s3943_s3 + $0x98] sm:$0xff] }
 0x2fd   :  { %v2473_v51 = vpop.eup %2472 }
 0x2fe   :  { %v911_v37 = vadd.f32 %v910_v60, %v4016_v45  ;;  %v913_v1 = vsub.f32 1.0, %v2473_v51  ;;  %v915_v0 = vmul.f32 %v2473_v51, %v3222_v5  ;;  %v3440_v45 = vld [vmem:[%s3943_s3 + $0xc8] sm:$0xff]  ;;  %v3447_v60 = vld [vmem:[%s3943_s3 + $0xc0] sm:$0xff] }
 0x2ff   :  { %v3510_v51 = vld [vmem:[%s3944_s4 + $0x48] sm:$0xff] }
 0x300   :  { %2474 = vtanh.f32 %v911_v37  ;;  %v3504_v37 = vld [vmem:[%s3943_s3 + $0x90] sm:$0xff] }
 0x30d   :  { %v2475_v25 = vpop.eup %2474 }
 0x30e   :  { %v914_v61 = vmul.f32 %v2475_v25, %v913_v1  ;;  %v3516_v1 = vld [vmem:[%s3943_s3 + $0x88] sm:$0xff]  ;;  %v3523_v25 = vld [vmem:[%s3943_s3 + $0x80] sm:$0xff] }
 0x310   :  { %v916_v3 = vadd.f32 %v915_v0, %v914_v61  ;;  %v3529_v61 = vld [vmem:[%s3944_s4 + $0x40] sm:$0xff]  ;;  %v3535_v0 = vld [vmem:[%s3943_s3 + $0x78] sm:$0xff] }
 0x312   :  { %v3300_v31 = vsel %vm1930_vm5, %v916_v3, %v3222_v5  ;;  %v3434_v5 = vld [vmem:[%s3944_s4 + $0x68] sm:$0xff]  ;;  %v3542_v3 = vld [vmem:[%s3943_s3 + $0x70] sm:$0xff] }
 0x313   :  { %992 = vmatmul.mubr.f32.vlgmr.msra.gmra.mxu0 %v3300_v31  ;;  %2264 = vmatmul.mubr.f32.vlgmr.msra.gmra.mxu1 %v3300_v31 }
 0x314   :  { %1100 = vmatpush1.msra.mxu0 %v2654_v6  ;;  %2267 = vmatpush3.msra.mxu1 %v2796_v29  ;;  %v4017_v6 = vld [vmem:[#allocation6_spill] sm:$0xff] }
 0x315   :  { %1101 = vmatprep.subr.mxu0 %v2660_v7  ;;  %2268 = vmatprep.subr.mxu1 %v3999_v48  ;;  %v4018_v7 = vld [vmem:[#allocation9_spill] sm:$0xff] }
 0x316   :  { %1102 = vmatpush1.msra.mxu0 %v2667_v8  ;;  %2269 = vmatpush3.msra.mxu1 %v2835_v35  ;;  %v4019_v8 = vld [vmem:[#allocation7_spill] sm:$0xff]  ;;  %v4025_v35 = vld [vmem:[#allocation26_spill] sm:$0xff] }
 0x317   :  { %1103 = vmatprep.subr.mxu0 %v2677_v10  ;;  %2270 = vmatprep.subr.mxu1 %v3999_v48  ;;  %v4020_v10 = vld [vmem:[#allocation8_spill] sm:$0xff] }
 0x318   :  { %1104 = vmatpush1.msra.mxu0 %v2683_v11  ;;  %2271 = vmatpush3.msra.mxu1 %v2872_v41  ;;  %v4021_v11 = vld [vmem:[#allocation10_spill] sm:$0xff] }
 0x319   :  { %1105 = vmatprep.subr.mxu0 %v2689_v12  ;;  %2272 = vmatprep.subr.mxu1 %v3999_v48  ;;  %v3372_v12 = vld [vmem:[%s3943_s3 + $0xf8] sm:$0xff] }
 0x31a   :  { %1106 = vmatpush1.msra.mxu0 %v2696_v13  ;;  %2273 = vmatpush3.msra.mxu1 %v2908_v47  ;;  %4022 = vst [vmem:[#allocation11_spill] sm:$0xff] %v3372_v12 }
 0x31b   :  { %1107 = vmatprep.subr.mxu0 %v2708_v15  ;;  %2274 = vmatprep.subr.mxu1 %v3999_v48 }
 0x31c   :  { %1108 = vmatpush1.msra.mxu0 %v2714_v16  ;;  %2275 = vmatpush3.msra.mxu1 %v2922_v49  ;;  %v4023_v16 = vld [vmem:[#allocation15_spill] sm:$0xff] }
 0x31d   :  { %1109 = vmatprep.subr.mxu0 %v2720_v17  ;;  %2276 = vmatprep.subr.mxu1 %v3999_v48  ;;  %v3390_v49 = vld [vmem:[%s3943_s3 + $0xf0] sm:$0xff] }
 0x31e   :  { %1110 = vmatpush1.msra.mxu0 %v2731_v19  ;;  %2277 = vmatpush3.msra.mxu1 %v2931_v50  ;;  %v3396_v50 = vld [vmem:[%s3944_s4 + $0x78] sm:$0xff] }
 0x31f   :  { %1111 = vmatprep.subr.mxu0 %v2743_v21  ;;  %2278 = vmatprep.subr.mxu1 %v3999_v48 }
 0x320   :  { %1112 = vmatpush1.msra.mxu0 %v2749_v22  ;;  %2279 = vmatpush3.msra.mxu1 %v2942_v52  ;;  %v3402_v52 = vld [vmem:[%s3943_s3 + $0xe8] sm:$0xff] }
 0x321   :  { %1113 = vmatprep.subr.mxu0 %v2756_v23  ;;  %2280 = vmatprep.subr.mxu1 %v3999_v48  ;;  %v4024_v23 = vld [vmem:[#allocation16_spill] sm:$0xff] }
 0x322   :  { %1114 = vmatpush1.msra.mxu0 %v2765_v24  ;;  %2281 = vmatpush3.msra.mxu1 %v2951_v53  ;;  %v3409_v53 = vld [vmem:[%s3943_s3 + $0xe0] sm:$0xff] }
 0x323   :  { %1115 = vmatprep.subr.mxu0 %v2777_v26  ;;  %2282 = vmatprep.subr.mxu1 %v3999_v48 }
 0x324   :  { %1116 = vmatpush1.msra.mxu0 %v2783_v27  ;;  %2283 = vmatpush3.msra.mxu1 %v2962_v54  ;;  %v3415_v54 = vld [vmem:[%s3944_s4 + $0x70] sm:$0xff] }
 0x325   :  { %1117 = vmatprep.subr.mxu0 %v2790_v28  ;;  %2284 = vmatprep.subr.mxu1 %v3999_v48 }
 0x326   :  { %1118 = vmatpush1.msra.mxu0 %v2804_v30  ;;  %2285 = vmatpush3.msra.mxu1 %v2971_v55  ;;  %v3421_v55 = vld [vmem:[%s3943_s3 + $0xd8] sm:$0xff] }
 0x327   :  { %1119 = vmatprep.subr.mxu0 %v2816_v32  ;;  %2286 = vmatprep.subr.mxu1 %v3999_v48 }
 0x328   :  { %1120 = vmatpush1.msra.mxu0 %v2822_v33  ;;  %2287 = vmatpush3.msra.mxu1 %v2981_v56  ;;  %v3428_v56 = vld [vmem:[%s3943_s3 + $0xd0] sm:$0xff] }
 0x329   :  { %1121 = vmatprep.subr.mxu0 %v2829_v34  ;;  %2288 = vmatprep.subr.mxu1 %v3999_v48 }
 0x32a   :  { %1122 = vmatpush1.msra.mxu0 %v2843_v36  ;;  %2289 = vmatpush3.msra.mxu1 %v2990_v57 }
 0x32b   :  { %1123 = vmatprep.subr.mxu0 %v2853_v38  ;;  %2290 = vmatprep.subr.mxu1 %v3999_v48 }
 0x32c   :  { %1124 = vmatpush1.msra.mxu0 %v2859_v39  ;;  %2291 = vmatpush3.msra.mxu1 %v3000_v58 }
 0x32d   :  { %1125 = vmatprep.subr.mxu0 %v2866_v40  ;;  %2292 = vmatprep.subr.mxu1 %v3999_v48 }
 0x32e   :  { %1126 = vmatpush1.msra.mxu0 %v2879_v42  ;;  %2293 = vmatpush3.msra.mxu1 %v3009_v59 }
 0x32f   :  { %1127 = vmatprep.subr.mxu0 %v2889_v44  ;;  %2294 = vmatprep.subr.mxu1 %v3999_v48 }
 0x330   :  { %1128 = vmatpush1.msra.mxu0 %v4017_v6  ;;  %2295 = vmatpush3.msra.mxu1 %v4018_v7  ;;  %v3554_v6 = vld [vmem:[%s3943_s3 + $0x68] sm:$0xff] }
 0x331   :  { %1129 = vmatprep.subr.mxu0 %v4019_v8  ;;  %2296 = vmatprep.subr.mxu1 %v3999_v48  ;;  %v3561_v8 = vld [vmem:[%s3943_s3 + $0x60] sm:$0xff] }
 0x332   :  { %1130 = vmatpush1.msra.mxu0 %v4020_v10  ;;  %1163 = vmatprep.mubr.f32.mxu0 %v3999_v48  ;;  %v3567_v10 = vld [vmem:[%s3944_s4 + $0x30] sm:$0xff] }
 0x333   :  { %2297 = vmatpush3.msra.mxu1 %v4021_v11  ;;  %2298 = vmatprep.mubr.msk.f32.mxu1 %vm2581_vm2, %v3999_v48 }
 0x334   :  { %1271 = vmatprep.subr.mxu0 %v3372_v12  ;;  %2301 = vmatprep.subr.mxu1 %v3999_v48 }
 0x3d3   :  { %v993_v13 = vpop.f32.mrf.mxu0  ;;  %v1078_v15 = vpop.f32.mrf.mxu1 }
 0x3d4   :  { %v998_v17 = vadd.f32 %v993_v13, %v4023_v16  ;;  %v1079_v32 = vadd.f32 %v3140_v62, %v1078_v15  ;;  %v3573_v13 = vld [vmem:[%s3943_s3 + $0x58] sm:$0xff]  ;;  %v3580_v15 = vld [vmem:[%s3943_s3 + $0x50] sm:$0xff]  ;;  %v3586_v16 = vld [vmem:[%s3944_s4 + $0x28] sm:$0xff] }
 0x3d5   :  { %v2265_v19 = vpop.f32.mrf.mxu1  ;;  %v995_v22 = vpop.f32.mrf.mxu0 }
 0x3d6   :  { %v1931_v21 = vmul.f32 -1.442695, %v998_v17  ;;  %v1005_v24 = vadd.f32 %v995_v22, %v4024_v23  ;;  %v3592_v17 = vld [vmem:[%s3943_s3 + $0x48] sm:$0xff]  ;;  %v3599_v19 = vld [vmem:[%s3943_s3 + $0x40] sm:$0xff]  ;;  %v3613_v22 = vld [vmem:[%s3943_s3 + $0x30] sm:$0xff] }
 0x3d7   :  { %v3627_v23 = vld [vmem:[%s3943_s3 + $0x20] sm:$0xff] }
 0x3d8   :  { %2476 = vpow2.f32 %v1931_v21  ;;  %v1932_v26 = vmul.f32 -1.442695, %v1005_v24  ;;  %v3606_v21 = vld [vmem:[%s3943_s3 + $0x38] sm:$0xff]  ;;  %v3641_v24 = vld [vmem:[%s3943_s3 + $0x10] sm:$0xff] }
 0x3d9   :  { %4026 = vst [vmem:[#allocation12_spill] sm:$0xff] %v3641_v24 }
 0x3da   :  { %2478 = vpow2.f32 %v1932_v26  ;;  %v3655_v26 = vld [vmem:[%s3943_s3] sm:$0xff] }
 0x3db   :  { %4028 = vst [vmem:[#allocation5_spill] sm:$0xff] %v3655_v26 }
 0x3e5   :  { %v2477_v27 = vpop.eup %2476 }
 0x3e6   :  { %v1002_v28 = vadd.f32 1.0, %v2477_v27 }
 0x3e7   :  { %v2479_v29 = vpop.eup %2478 }
 0x3e8   :  { %2480 = vrcp.f32 %v1002_v28  ;;  %v1009_v30 = vadd.f32 1.0, %v2479_v29  ;;  %v4029_v28 = vld [vmem:[#allocation18_spill] sm:$0xff] }
 0x3ea   :  { %2482 = vrcp.f32 %v1009_v30 }
 0x3f5   :  { %v2481_v33 = vpop.eup %2480 }
 0x3f6   :  { %v1082_v34 = vmul.f32 %v2481_v33, %v1079_v32 }
 0x3f7   :  { %v2483_v38 = vpop.eup %2482 }
 0x3f8   :  { %v1083_v36 = vadd.f32 %v1082_v34, %v4025_v35  ;;  %v1085_v39 = vsub.f32 1.0, %v2483_v38  ;;  %v1087_v42 = vmul.f32 %v2483_v38, %v3300_v31  ;;  %v4030_v34 = vld [vmem:[#allocation19_spill] sm:$0xff] }
 0x3fa   :  { %2484 = vtanh.f32 %v1083_v36 }
 0x407   :  { %v2485_v40 = vpop.eup %2484 }
 0x408   :  { %v1086_v41 = vmul.f32 %v2485_v40, %v1085_v39 }
 0x40a   :  { %v1088_v44 = vadd.f32 %v1087_v42, %v1086_v41 }
 0x40c   :  { %v3383_v47 = vsel %vm1933_vm6, %v1088_v44, %v3300_v31  ;;  %v3548_v31 = vld [vmem:[%s3944_s4 + $0x38] sm:$0xff] }
 0x40d   :  { %1164 = vmatmul.mubr.f32.vlgmr.msra.gmra.mxu0 %v3383_v47  ;;  %2299 = vmatmul.mubr.f32.vlgmr.msra.gmra.mxu1 %v3383_v47 }
 0x40e   :  { %1272 = vmatpush1.msra.mxu0 %v3390_v49  ;;  %2302 = vmatpush3.msra.mxu1 %v3396_v50 }
 0x40f   :  { %1273 = vmatprep.subr.mxu0 %v3402_v52  ;;  %2303 = vmatprep.subr.mxu1 %v3999_v48 }
 0x410   :  { %1274 = vmatpush1.msra.mxu0 %v3409_v53  ;;  %2304 = vmatpush3.msra.mxu1 %v3415_v54 }
 0x411   :  { %1275 = vmatprep.subr.mxu0 %v3421_v55  ;;  %2305 = vmatprep.subr.mxu1 %v3999_v48 }
 0x412   :  { %1276 = vmatpush1.msra.mxu0 %v3428_v56  ;;  %2306 = vmatpush3.msra.mxu1 %v3434_v5 }
 0x413   :  { %1277 = vmatprep.subr.mxu0 %v3440_v45  ;;  %2307 = vmatprep.subr.mxu1 %v3999_v48 }
 0x414   :  { %1278 = vmatpush1.msra.mxu0 %v3447_v60  ;;  %2308 = vmatpush3.msra.mxu1 %v3453_v2 }
 0x415   :  { %1279 = vmatprep.subr.mxu0 %v3459_v46  ;;  %2309 = vmatprep.subr.mxu1 %v3999_v48 }
 0x416   :  { %1280 = vmatpush1.msra.mxu0 %v3466_v4  ;;  %2310 = vmatpush3.msra.mxu1 %v3472_v20 }
 0x417   :  { %1281 = vmatprep.subr.mxu0 %v3478_v63  ;;  %2311 = vmatprep.subr.mxu1 %v3999_v48 }
 0x418   :  { %1282 = vmatpush1.msra.mxu0 %v3485_v18  ;;  %2312 = vmatpush3.msra.mxu1 %v3491_v14 }
 0x419   :  { %1283 = vmatprep.subr.mxu0 %v3497_v43  ;;  %2313 = vmatprep.subr.mxu1 %v3999_v48 }
 0x41a   :  { %1284 = vmatpush1.msra.mxu0 %v3504_v37  ;;  %2314 = vmatpush3.msra.mxu1 %v3510_v51 }
 0x41b   :  { %1285 = vmatprep.subr.mxu0 %v3516_v1  ;;  %2315 = vmatprep.subr.mxu1 %v3999_v48 }
 0x41c   :  { %1286 = vmatpush1.msra.mxu0 %v3523_v25  ;;  %2316 = vmatpush3.msra.mxu1 %v3529_v61 }
 0x41d   :  { %1287 = vmatprep.subr.mxu0 %v3535_v0  ;;  %2317 = vmatprep.subr.mxu1 %v3999_v48 }
 0x41e   :  { %1288 = vmatpush1.msra.mxu0 %v3542_v3  ;;  %2318 = vmatpush3.msra.mxu1 %v3548_v31 }
 0x41f   :  { %1289 = vmatprep.subr.mxu0 %v3554_v6  ;;  %2319 = vmatprep.subr.mxu1 %v3999_v48 }
 0x420   :  { %1290 = vmatpush1.msra.mxu0 %v3561_v8  ;;  %2320 = vmatpush3.msra.mxu1 %v3567_v10 }
 0x421   :  { %1291 = vmatprep.subr.mxu0 %v3573_v13  ;;  %2321 = vmatprep.subr.mxu1 %v3999_v48 }
 0x422   :  { %1292 = vmatpush1.msra.mxu0 %v3580_v15  ;;  %2322 = vmatpush3.msra.mxu1 %v3586_v16 }
 0x423   :  { %1293 = vmatprep.subr.mxu0 %v3592_v17  ;;  %2323 = vmatprep.subr.mxu1 %v3999_v48 }
 0x424   :  { %1294 = vmatpush1.msra.mxu0 %v3599_v19  ;;  %2324 = vmatpush3.msra.mxu1 %v2990_v57  ;;  %v3620_v57 = vld [vmem:[%s3943_s3 + $0x28] sm:$0xff] }
 0x425   :  { %1295 = vmatprep.subr.mxu0 %v3606_v21  ;;  %2325 = vmatprep.subr.mxu1 %v3999_v48 }
 0x426   :  { %1296 = vmatpush1.msra.mxu0 %v3613_v22  ;;  %2326 = vmatpush3.msra.mxu1 %v3000_v58  ;;  %v3634_v58 = vld [vmem:[%s3943_s3 + $0x18] sm:$0xff] }
 0x427   :  { %1297 = vmatprep.subr.mxu0 %v3620_v57  ;;  %2327 = vmatprep.subr.mxu1 %v3999_v48 }
 0x428   :  { %1298 = vmatpush1.msra.mxu0 %v3627_v23  ;;  %2328 = vmatpush3.msra.mxu1 %v3009_v59  ;;  %v3648_v59 = vld [vmem:[%s3943_s3 + $0x8] sm:$0xff] }
 0x429   :  { %1299 = vmatprep.subr.mxu0 %v3634_v58  ;;  %2329 = vmatprep.subr.mxu1 %v3999_v48  ;;  %4027 = vst [vmem:[#allocation17_spill] sm:$0xff] %v3648_v59 }
 0x42a   :  { %1300 = vmatpush1.msra.mxu0 %v3641_v24  ;;  %2330 = vmatpush3.msra.mxu1 %v4018_v7 }
 0x42b   :  { %1301 = vmatprep.subr.mxu0 %v3648_v59  ;;  %2331 = vmatprep.subr.mxu1 %v3999_v48 }
 0x42c   :  { %1302 = vmatpush1.msra.mxu0 %v3655_v26  ;;  %1335 = vmatprep.mubr.f32.mxu0 %v3999_v48 }
 0x42d   :  { %2332 = vmatpush3.msra.mxu1 %v4021_v11  ;;  %2333 = vmatprep.mubr.msk.f32.mxu1 %vm2581_vm2, %v3999_v48 }
 0x42e   :  { %1443 = vmatprep.subr.mxu0 %v3372_v12  ;;  %2336 = vmatprep.subr.mxu1 %v3999_v48  ;;  %v4031_v12 = vld [vmem:[#allocation29_spill] sm:$0xff] }
 0x4cd   :  { %v1165_v7 = vpop.f32.mrf.mxu0  ;;  %v1250_v27 = vpop.f32.mrf.mxu1 }
 0x4ce   :  { %v1170_v29 = vadd.f32 %v1165_v7, %v4029_v28  ;;  %v1251_v41 = vadd.f32 %v3140_v62, %v1250_v27  ;;  %v3741_v27 = vld [vmem:[%s3944_s4 + $0x10] sm:$0xff] }
 0x4cf   :  { %v2300_v30 = vpop.f32.mrf.mxu1  ;;  %v1167_v33 = vpop.f32.mrf.mxu0 }
 0x4d0   :  { %v1934_v32 = vmul.f32 -1.442695, %v1170_v29  ;;  %v1177_v35 = vadd.f32 %v1167_v33, %v4030_v34 }
 0x4d2   :  { %2486 = vpow2.f32 %v1934_v32  ;;  %v1935_v36 = vmul.f32 -1.442695, %v1177_v35 }
 0x4d4   :  { %2488 = vpow2.f32 %v1935_v36  ;;  %v3750_v36 = vld [vmem:[%s3944_s4 + $0x8] sm:$0xff] }
 0x4d5   :  { %4032 = vst [vmem:[#allocation13_spill] sm:$0xff] %v3750_v36 }
 0x4df   :  { %v2487_v11 = vpop.eup %2486 }
 0x4e0   :  { %v1174_v38 = vadd.f32 1.0, %v2487_v11  ;;  %v3760_v11 = vld [vmem:[%s3944_s4] sm:$0xff] }
 0x4e1   :  { %v2489_v39 = vpop.eup %2488  ;;  %4033 = vst [vmem:[#allocation14_spill] sm:$0xff] %v3760_v11 }
 0x4e2   :  { %2490 = vrcp.f32 %v1174_v38  ;;  %v1181_v40 = vadd.f32 1.0, %v2489_v39  ;;  %v4034_v38 = vld [vmem:[#allocation11_spill] sm:$0xff] }
 0x4e4   :  { %2492 = vrcp.f32 %v1181_v40 }
 0x4ef   :  { %v2491_v42 = vpop.eup %2490 }
 0x4f0   :  { %v1254_v44 = vmul.f32 %v2491_v42, %v1251_v41  ;;  %v4035_v41 = vld [vmem:[#allocation20_spill] sm:$0xff] }
 0x4f1   :  { %v2493_v28 = vpop.eup %2492 }
 0x4f2   :  { %v1255_v7 = vadd.f32 %v1254_v44, %v4031_v12  ;;  %v1257_v29 = vsub.f32 1.0, %v2493_v28  ;;  %v1259_v33 = vmul.f32 %v2493_v28, %v3383_v47  ;;  %v3723_v12 = vld [vmem:[%s3944_s4 + $0x20] sm:$0xff] }
 0x4f4   :  { %2494 = vtanh.f32 %v1255_v7 }
 0x501   :  { %v2495_v30 = vpop.eup %2494 }
 0x502   :  { %v1258_v32 = vmul.f32 %v2495_v30, %v1257_v29  ;;  %v4036_v29 = vld [vmem:[#allocation21_spill] sm:$0xff] }
 0x504   :  { %v1260_v34 = vadd.f32 %v1259_v33, %v1258_v32 }
 0x506   :  { %v3671_v35 = vsel %vm1936_vm7, %v1260_v34, %v3383_v47  ;;  %v3732_v47 = vld [vmem:[%s3944_s4 + $0x18] sm:$0xff] }
 0x507   :  { %1336 = vmatmul.mubr.f32.vlgmr.msra.gmra.mxu0 %v3671_v35  ;;  %2334 = vmatmul.mubr.f32.vlgmr.msra.gmra.mxu1 %v3671_v35 }
 0x508   :  { %1444 = vmatpush1.msra.mxu0 %v3390_v49  ;;  %2337 = vmatpush3.msra.mxu1 %v3396_v50 }
 0x509   :  { %1445 = vmatprep.subr.mxu0 %v3402_v52  ;;  %2338 = vmatprep.subr.mxu1 %v3999_v48 }
 0x50a   :  { %1446 = vmatpush1.msra.mxu0 %v3409_v53  ;;  %2339 = vmatpush3.msra.mxu1 %v3415_v54 }
 0x50b   :  { %1447 = vmatprep.subr.mxu0 %v3421_v55  ;;  %2340 = vmatprep.subr.mxu1 %v3999_v48 }
 0x50c   :  { %1448 = vmatpush1.msra.mxu0 %v3428_v56  ;;  %2341 = vmatpush3.msra.mxu1 %v3434_v5 }
 0x50d   :  { %1449 = vmatprep.subr.mxu0 %v3440_v45  ;;  %2342 = vmatprep.subr.mxu1 %v3999_v48 }
 0x50e   :  { %1450 = vmatpush1.msra.mxu0 %v3447_v60  ;;  %2343 = vmatpush3.msra.mxu1 %v3453_v2 }
 0x50f   :  { %1451 = vmatprep.subr.mxu0 %v3459_v46  ;;  %2344 = vmatprep.subr.mxu1 %v3999_v48 }
 0x510   :  { %1452 = vmatpush1.msra.mxu0 %v3466_v4  ;;  %2345 = vmatpush3.msra.mxu1 %v3472_v20 }
 0x511   :  { %1453 = vmatprep.subr.mxu0 %v3478_v63  ;;  %2346 = vmatprep.subr.mxu1 %v3999_v48 }
 0x512   :  { %1454 = vmatpush1.msra.mxu0 %v3485_v18  ;;  %2347 = vmatpush3.msra.mxu1 %v3491_v14 }
 0x513   :  { %1455 = vmatprep.subr.mxu0 %v3497_v43  ;;  %2348 = vmatprep.subr.mxu1 %v3999_v48 }
 0x514   :  { %1456 = vmatpush1.msra.mxu0 %v3504_v37  ;;  %2349 = vmatpush3.msra.mxu1 %v3510_v51 }
 0x515   :  { %1457 = vmatprep.subr.mxu0 %v3516_v1  ;;  %2350 = vmatprep.subr.mxu1 %v3999_v48 }
 0x516   :  { %1458 = vmatpush1.msra.mxu0 %v3523_v25  ;;  %2351 = vmatpush3.msra.mxu1 %v3529_v61 }
 0x517   :  { %1459 = vmatprep.subr.mxu0 %v3535_v0  ;;  %2352 = vmatprep.subr.mxu1 %v3999_v48 }
 0x518   :  { %1460 = vmatpush1.msra.mxu0 %v3542_v3  ;;  %2353 = vmatpush3.msra.mxu1 %v3548_v31 }
 0x519   :  { %1461 = vmatprep.subr.mxu0 %v3554_v6  ;;  %2354 = vmatprep.subr.mxu1 %v3999_v48 }
 0x51a   :  { %1462 = vmatpush1.msra.mxu0 %v3561_v8  ;;  %2355 = vmatpush3.msra.mxu1 %v3567_v10 }
 0x51b   :  { %1463 = vmatprep.subr.mxu0 %v3573_v13  ;;  %2356 = vmatprep.subr.mxu1 %v3999_v48 }
 0x51c   :  { %1464 = vmatpush1.msra.mxu0 %v3580_v15  ;;  %2357 = vmatpush3.msra.mxu1 %v3586_v16 }
 0x51d   :  { %1465 = vmatprep.subr.mxu0 %v3592_v17  ;;  %2358 = vmatprep.subr.mxu1 %v3999_v48 }
 0x51e   :  { %1466 = vmatpush1.msra.mxu0 %v3599_v19  ;;  %2359 = vmatpush3.msra.mxu1 %v3723_v12 }
 0x51f   :  { %1467 = vmatprep.subr.mxu0 %v3606_v21  ;;  %2360 = vmatprep.subr.mxu1 %v3999_v48 }
 0x520   :  { %1468 = vmatpush1.msra.mxu0 %v3613_v22  ;;  %2361 = vmatpush3.msra.mxu1 %v3732_v47 }
 0x521   :  { %1469 = vmatprep.subr.mxu0 %v3620_v57  ;;  %2362 = vmatprep.subr.mxu1 %v3999_v48 }
 0x522   :  { %1470 = vmatpush1.msra.mxu0 %v3627_v23  ;;  %2363 = vmatpush3.msra.mxu1 %v3741_v27 }
 0x523   :  { %1471 = vmatprep.subr.mxu0 %v3634_v58  ;;  %2364 = vmatprep.subr.mxu1 %v3999_v48 }
 0x524   :  { %1472 = vmatpush1.msra.mxu0 %v3641_v24  ;;  %2365 = vmatpush3.msra.mxu1 %v3750_v36  ;;  %v4037_v24 = vld [vmem:[#allocation28_spill] sm:$0xff] }
 0x525   :  { %1473 = vmatprep.subr.mxu0 %v3648_v59  ;;  %2366 = vmatprep.subr.mxu1 %v3999_v48 }
 0x526   :  { %1474 = vmatpush1.msra.mxu0 %v3655_v26  ;;  %1507 = vmatprep.mubr.f32.mxu0 %v3999_v48 }
 0x527   :  { %2367 = vmatpush3.msra.mxu1 %v3760_v11  ;;  %2368 = vmatprep.mubr.msk.f32.mxu1 %vm2581_vm2, %v3999_v48 }
 0x528   :  { %1615 = vmatprep.subr.mxu0 %v4034_v38  ;;  %2371 = vmatprep.subr.mxu1 %v3999_v48 }
 0x5c7   :  { %v1337_v39 = vpop.f32.mrf.mxu0  ;;  %v1422_v40 = vpop.f32.mrf.mxu1 }
 0x5c8   :  { %v1342_v42 = vadd.f32 %v1337_v39, %v4035_v41  ;;  %v1423_v38 = vadd.f32 %v3140_v62, %v1422_v40  ;;  %v4038_v62 = vld [vmem:[#allocation12_spill] sm:$0xff] }
 0x5c9   :  { %v2335_v44 = vpop.f32.mrf.mxu1  ;;  %v1339_v28 = vpop.f32.mrf.mxu0 }
 0x5ca   :  { %v1937_v7 = vmul.f32 -1.442695, %v1342_v42  ;;  %v1349_v30 = vadd.f32 %v1339_v28, %v4036_v29 }
 0x5cc   :  { %2496 = vpow2.f32 %v1937_v7  ;;  %v1938_v32 = vmul.f32 -1.442695, %v1349_v30 }
 0x5ce   :  { %2498 = vpow2.f32 %v1938_v32 }
 0x5d9   :  { %v2497_v33 = vpop.eup %2496 }
 0x5da   :  { %v1346_v34 = vadd.f32 1.0, %v2497_v33  ;;  %v4046_v33 = vld [vmem:[#allocation24_spill] sm:$0xff] }
 0x5db   :  { %v2499_v11 = vpop.eup %2498 }
 0x5dc   :  { %2500 = vrcp.f32 %v1346_v34  ;;  %v1353_v26 = vadd.f32 1.0, %v2499_v11  ;;  %v16_v11 = vstv %s3949_s8 }
 0x5dd   :  { %17 = vst [vmem:[#allocation4] sm:$0x1] %v16_v11 }
 0x5de   :  { %2502 = vrcp.f32 %v1353_v26  ;;  %v1790_v26 = vld [vmem:[%s3948_s7 + $0x28] sm:$0xff] }
 0x5e9   :  { %v2501_v59 = vpop.eup %2500 }
 0x5ea   :  { %v1426_v36 = vmul.f32 %v2501_v59, %v1423_v38  ;;  %v1791_v59 = vld [vmem:[%s3948_s7 + $0x30] sm:$0xff] }
 0x5eb   :  { %v2503_v41 = vpop.eup %2502 }
 0x5ec   :  { %v1427_v39 = vadd.f32 %v1426_v36, %v4037_v24  ;;  %v1429_v42 = vsub.f32 1.0, %v2503_v41  ;;  %v1431_v28 = vmul.f32 %v2503_v41, %v3671_v35  ;;  %v1792_v24 = vld [vmem:[%s3948_s7 + $0x38] sm:$0xff]  ;;  %v1785_v36 = vld [vmem:[%s3948_s7] sm:$0xff] }
 0x5ee   :  { %2504 = vtanh.f32 %v1427_v39 }
 0x5fb   :  { %v2505_v44 = vpop.eup %2504 }
 0x5fc   :  { %v1430_v7 = vmul.f32 %v2505_v44, %v1429_v42  ;;  %v4047_v42 = vld [vmem:[#allocation25_spill] sm:$0xff] }
 0x5fe   :  { %v1432_v29 = vadd.f32 %v1431_v28, %v1430_v7 }
 0x600   :  { %v3774_v30 = vsel %vm1939_vm8, %v1432_v29, %v3671_v35  ;;  %v1789_v35 = vld [vmem:[%s3948_s7 + $0x20] sm:$0xff] }
 0x601   :  { %1508 = vmatmul.mubr.f32.vlgmr.msra.gmra.mxu0 %v3774_v30  ;;  %2369 = vmatmul.mubr.f32.vlgmr.msra.gmra.mxu1 %v3774_v30 }
 0x602   :  { %1616 = vmatpush1.msra.mxu0 %v3390_v49  ;;  %2372 = vmatpush3.msra.mxu1 %v3396_v50  ;;  %v4039_v49 = vld [vmem:[#allocation13_spill] sm:$0xff] }
 0x603   :  { %1617 = vmatprep.subr.mxu0 %v3402_v52  ;;  %2373 = vmatprep.subr.mxu1 %v3999_v48  ;;  %v4040_v50 = vld [vmem:[#allocation17_spill] sm:$0xff] }
 0x604   :  { %1618 = vmatpush1.msra.mxu0 %v3409_v53  ;;  %2374 = vmatpush3.msra.mxu1 %v3415_v54  ;;  %v4041_v52 = vld [vmem:[#allocation5_spill] sm:$0xff]  ;;  %v4042_v53 = vld [vmem:[#allocation14_spill] sm:$0xff] }
 0x605   :  { %1619 = vmatprep.subr.mxu0 %v3421_v55  ;;  %2375 = vmatprep.subr.mxu1 %v3999_v48 }
 0x606   :  { %1620 = vmatpush1.msra.mxu0 %v3428_v56  ;;  %2376 = vmatpush3.msra.mxu1 %v3434_v5  ;;  %v4043_v56 = vld [vmem:[#allocation22_spill] sm:$0xff] }
 0x607   :  { %1621 = vmatprep.subr.mxu0 %v3440_v45  ;;  %2377 = vmatprep.subr.mxu1 %v3999_v48 }
 0x608   :  { %1622 = vmatpush1.msra.mxu0 %v3447_v60  ;;  %2378 = vmatpush3.msra.mxu1 %v3453_v2 }
 0x609   :  { %1623 = vmatprep.subr.mxu0 %v3459_v46  ;;  %2379 = vmatprep.subr.mxu1 %v3999_v48  ;;  %v4044_v46 = vld [vmem:[#allocation23_spill] sm:$0xff] }
 0x60a   :  { %1624 = vmatpush1.msra.mxu0 %v3466_v4  ;;  %2380 = vmatpush3.msra.mxu1 %v3472_v20 }
 0x60b   :  { %1625 = vmatprep.subr.mxu0 %v3478_v63  ;;  %2381 = vmatprep.subr.mxu1 %v3999_v48 }
 0x60c   :  { %1626 = vmatpush1.msra.mxu0 %v3485_v18  ;;  %2382 = vmatpush3.msra.mxu1 %v3491_v14 }
 0x60d   :  { %1627 = vmatprep.subr.mxu0 %v3497_v43  ;;  %2383 = vmatprep.subr.mxu1 %v3999_v48 }
 0x60e   :  { %1628 = vmatpush1.msra.mxu0 %v3504_v37  ;;  %2384 = vmatpush3.msra.mxu1 %v3510_v51  ;;  %v3849_v37 = vld [vmem:[%s3947_s6] ss:$0 sm:$0xff] }
 0x60f   :  { %1629 = vmatprep.subr.mxu0 %v3516_v1  ;;  %2385 = vmatprep.subr.mxu1 %v3999_v48 }
 0x610   :  { %1630 = vmatpush1.msra.mxu0 %v3523_v25  ;;  %2386 = vmatpush3.msra.mxu1 %v3529_v61  ;;  %v4045_v61 = vld [vmem:[#allocation31_spill] sm:$0xff] }
 0x611   :  { %1631 = vmatprep.subr.mxu0 %v3535_v0  ;;  %2387 = vmatprep.subr.mxu1 %v3999_v48 }
 0x612   :  { %1632 = vmatpush1.msra.mxu0 %v3542_v3  ;;  %2388 = vmatpush3.msra.mxu1 %v3548_v31 }
 0x613   :  { %1633 = vmatprep.subr.mxu0 %v3554_v6  ;;  %2389 = vmatprep.subr.mxu1 %v3999_v48 }
 0x614   :  { %1634 = vmatpush1.msra.mxu0 %v3561_v8  ;;  %2390 = vmatpush3.msra.mxu1 %v3567_v10 }
 0x615   :  { %1635 = vmatprep.subr.mxu0 %v3573_v13  ;;  %2391 = vmatprep.subr.mxu1 %v3999_v48 }
 0x616   :  { %1636 = vmatpush1.msra.mxu0 %v3580_v15  ;;  %2392 = vmatpush3.msra.mxu1 %v3586_v16  ;;  %v1800_v16 = vld [vmem:[%s3948_s7 + $0x78] sm:$0xff] }
 0x617   :  { %1637 = vmatprep.subr.mxu0 %v3592_v17  ;;  %2393 = vmatprep.subr.mxu1 %v3999_v48  ;;  %v1799_v17 = vld [vmem:[%s3948_s7 + $0x70] sm:$0xff] }
 0x618   :  { %1638 = vmatpush1.msra.mxu0 %v3599_v19  ;;  %2394 = vmatpush3.msra.mxu1 %v3723_v12  ;;  %v1798_v19 = vld [vmem:[%s3948_s7 + $0x68] sm:$0xff]  ;;  %v1788_v12 = vld [vmem:[%s3948_s7 + $0x18] sm:$0xff] }
 0x619   :  { %1639 = vmatprep.subr.mxu0 %v3606_v21  ;;  %2395 = vmatprep.subr.mxu1 %v3999_v48  ;;  %v1797_v21 = vld [vmem:[%s3948_s7 + $0x60] sm:$0xff] }
 0x61a   :  { %1640 = vmatpush1.msra.mxu0 %v3613_v22  ;;  %2396 = vmatpush3.msra.mxu1 %v3732_v47  ;;  %v1796_v22 = vld [vmem:[%s3948_s7 + $0x58] sm:$0xff]  ;;  %v1787_v47 = vld [vmem:[%s3948_s7 + $0x10] sm:$0xff] }
 0x61b   :  { %1641 = vmatprep.subr.mxu0 %v3620_v57  ;;  %2397 = vmatprep.subr.mxu1 %v3999_v48  ;;  %v1795_v57 = vld [vmem:[%s3948_s7 + $0x50] sm:$0xff] }
 0x61c   :  { %1642 = vmatpush1.msra.mxu0 %v3627_v23  ;;  %2398 = vmatpush3.msra.mxu1 %v3741_v27  ;;  %v1794_v23 = vld [vmem:[%s3948_s7 + $0x48] sm:$0xff] }
 0x61d   :  { %1643 = vmatprep.subr.mxu0 %v3634_v58  ;;  %2399 = vmatprep.subr.mxu1 %v3999_v48  ;;  %v1793_v58 = vld [vmem:[%s3948_s7 + $0x40] sm:$0xff]  ;;  %v1786_v27 = vld [vmem:[%s3948_s7 + $0x8] sm:$0xff] }
 0x61e   :  { %1644 = vmatpush1.msra.mxu0 %v4038_v62  ;;  %2400 = vmatpush3.msra.mxu1 %v4039_v49 }
 0x61f   :  { %1645 = vmatprep.subr.mxu0 %v4040_v50  ;;  %2401 = vmatprep.subr.mxu1 %v3999_v48 }
 0x620   :  { %1646 = vmatpush1.msra.mxu0 %v4041_v52  ;;  %1679 = vmatprep.mubr.f32.mxu0 %v3999_v48  ;;  %v4048_v52 = vld [vmem:[#allocation30_spill] sm:$0xff] }
 0x621   :  { %2402 = vmatpush3.msra.mxu1 %v4042_v53  ;;  %2403 = vmatprep.mubr.msk.f32.mxu1 %vm2581_vm2, %v3999_v48 }
 0x622   :  { %2406 = vmatprep.subr.mxu0 %v3999_v48 }
 0x6c1   :  { %v1509_v54 = vpop.f32.mrf.mxu0  ;;  %v1594_v55 = vpop.f32.mrf.mxu1 }
 0x6c2   :  { %v1514_v5 = vadd.f32 %v1509_v54, %v4043_v56  ;;  %v1595_v51 = vadd.f32 %v3849_v37, %v1594_v55 }
 0x6c3   :  { %v2370_v45 = vpop.f32.mrf.mxu1  ;;  %v1511_v2 = vpop.f32.mrf.mxu0 }
 0x6c4   :  { %v1940_v60 = vmul.f32 -1.442695, %v1514_v5  ;;  %v1521_v4 = vadd.f32 %v1511_v2, %v4044_v46  ;;  %v1946_v46 = vld [vmem:[#allocation4] ss:$0 sm:$0xff] }
 0x6c6   :  { %2506 = vpow2.f32 %v1940_v60  ;;  %v1941_v20 = vmul.f32 -1.442695, %v1521_v4 }
 0x6c8   :  { %2508 = vpow2.f32 %v1941_v20 }
 0x6d3   :  { %v2507_v63 = vpop.eup %2506 }
 0x6d4   :  { %v1518_v18 = vadd.f32 1.0, %v2507_v63 }
 0x6d5   :  { %v2509_v14 = vpop.eup %2508 }
 0x6d6   :  { %2510 = vrcp.f32 %v1518_v18  ;;  %v1525_v43 = vadd.f32 1.0, %v2509_v14 }
 0x6d8   :  { %2512 = vrcp.f32 %v1525_v43 }
 0x6e3   :  { %v2511_v1 = vpop.eup %2510 }
 0x6e4   :  { %v1598_v25 = vmul.f32 %v2511_v1, %v1595_v51 }
 0x6e5   :  { %v2513_v3 = vpop.eup %2512 }
 0x6e6   :  { %v1599_v0 = vadd.f32 %v1598_v25, %v4045_v61  ;;  %v1601_v31 = vsub.f32 1.0, %v2513_v3  ;;  %v1603_v10 = vmul.f32 %v2513_v3, %v3774_v30 }
 0x6e8   :  { %2514 = vtanh.f32 %v1599_v0 }
 0x6f5   :  { %v2515_v6 = vpop.eup %2514 }
 0x6f6   :  { %v1602_v8 = vmul.f32 %v2515_v6, %v1601_v31 }
 0x6f8   :  { %v1604_v13 = vadd.f32 %v1603_v10, %v1602_v8 }
 0x6fa   :  { %v3856_v15 = vsel %vm1942_vm9, %v1604_v13, %v3774_v30 }
 0x6fb   :  { %1680 = vmatmul.mubr.f32.vlgmr.msra.gmra.mxu0 %v3856_v15  ;;  %2404 = vmatmul.mubr.f32.vlgmr.msra.gmra.mxu1 %v3856_v15 }
 0x6fc   :  { %2438 = vmatprep.mubr.msk.f32.mxu0 %vm2581_vm2, %v3999_v48  ;;  %2407 = vmatpush3.msra.mxu0 %v1800_v16 }
 0x6fd   :  { %2408 = vmatprep.subr.mxu0 %v3999_v48 }
 0x6fe   :  { %2409 = vmatpush3.msra.mxu0 %v1799_v17 }
 0x6ff   :  { %2410 = vmatprep.subr.mxu0 %v3999_v48 }
 0x700   :  { %2411 = vmatpush3.msra.mxu0 %v1798_v19 }
 0x701   :  { %2412 = vmatprep.subr.mxu0 %v3999_v48 }
 0x702   :  { %2413 = vmatpush3.msra.mxu0 %v1797_v21 }
 0x703   :  { %2414 = vmatprep.subr.mxu0 %v3999_v48 }
 0x704   :  { %2415 = vmatpush3.msra.mxu0 %v1796_v22 }
 0x705   :  { %2416 = vmatprep.subr.mxu0 %v3999_v48 }
 0x706   :  { %2417 = vmatpush3.msra.mxu0 %v1795_v57 }
 0x707   :  { %2418 = vmatprep.subr.mxu0 %v3999_v48 }
 0x708   :  { %2419 = vmatpush3.msra.mxu0 %v1794_v23 }
 0x709   :  { %2420 = vmatprep.subr.mxu0 %v3999_v48 }
 0x70a   :  { %2421 = vmatpush3.msra.mxu0 %v1793_v58 }
 0x70b   :  { %2422 = vmatprep.subr.mxu0 %v3999_v48 }
 0x70c   :  { %2423 = vmatpush3.msra.mxu0 %v1792_v24 }
 0x70d   :  { %2424 = vmatprep.subr.mxu0 %v3999_v48 }
 0x70e   :  { %2425 = vmatpush3.msra.mxu0 %v1791_v59 }
 0x70f   :  { %2426 = vmatprep.subr.mxu0 %v3999_v48 }
 0x710   :  { %2427 = vmatpush3.msra.mxu0 %v1790_v26 }
 0x711   :  { %2428 = vmatprep.subr.mxu0 %v3999_v48 }
 0x712   :  { %2429 = vmatpush3.msra.mxu0 %v1789_v35 }
 0x713   :  { %2430 = vmatprep.subr.mxu0 %v3999_v48 }
 0x714   :  { %2431 = vmatpush3.msra.mxu0 %v1788_v12 }
 0x715   :  { %2432 = vmatprep.subr.mxu0 %v3999_v48 }
 0x716   :  { %2433 = vmatpush3.msra.mxu0 %v1787_v47 }
 0x717   :  { %2434 = vmatprep.subr.mxu0 %v3999_v48 }
 0x718   :  { %2435 = vmatpush3.msra.mxu0 %v1786_v27 }
 0x719   :  { %2436 = vmatprep.subr.mxu0 %v3999_v48 }
 0x71a   :  { %2437 = vmatpush3.msra.mxu0 %v1785_v36 }
 0x7bb   :  { %v1681_v40 = vpop.f32.mrf.mxu0  ;;  %v1766_v32 = vpop.f32.mrf.mxu1 }
 0x7bc   :  { %v1686_v34 = vadd.f32 %v1681_v40, %v4046_v33  ;;  %v1767_v62 = vadd.f32 %v3849_v37, %v1766_v32 }
 0x7bd   :  { %v2405_v38 = vpop.f32.mrf.mxu1  ;;  %v1683_v41 = vpop.f32.mrf.mxu0 }
 0x7be   :  { %v1943_v39 = vmul.f32 -1.442695, %v1686_v34  ;;  %v1693_v44 = vadd.f32 %v1683_v41, %v4047_v42 }
 0x7c0   :  { %2516 = vpow2.f32 %v1943_v39  ;;  %v1944_v7 = vmul.f32 -1.442695, %v1693_v44 }
 0x7c2   :  { %2518 = vpow2.f32 %v1944_v7 }
 0x7cd   :  { %v2517_v28 = vpop.eup %2516 }
 0x7ce   :  { %v1690_v48 = vadd.f32 1.0, %v2517_v28 }
 0x7cf   :  { %v2519_v29 = vpop.eup %2518 }
 0x7d0   :  { %2520 = vrcp.f32 %v1690_v48  ;;  %v1697_v30 = vadd.f32 1.0, %v2519_v29 }
 0x7d2   :  { %2522 = vrcp.f32 %v1697_v30 }
 0x7dd   :  { %v2521_v49 = vpop.eup %2520 }
 0x7de   :  { %v1770_v50 = vmul.f32 %v2521_v49, %v1767_v62 }
 0x7df   :  { %v2523_v54 = vpop.eup %2522 }
 0x7e0   :  { %v1771_v53 = vadd.f32 %v1770_v50, %v4048_v52  ;;  %v1773_v55 = vsub.f32 1.0, %v2523_v54  ;;  %v1775_v45 = vmul.f32 %v2523_v54, %v3856_v15 }
 0x7e2   :  { %2524 = vtanh.f32 %v1771_v53 }
 0x7ef   :  { %v2525_v56 = vpop.eup %2524 }
 0x7f0   :  { %v1774_v5 = vmul.f32 %v2525_v56, %v1773_v55 }
 0x7f2   :  { %v1776_v60 = vadd.f32 %v1775_v45, %v1774_v5 }
 0x7f4   :  { %v1780_v2 = vsel %vm1945_vm10, %v1776_v60, %v3856_v15 }
 0x7f5   :  { %2439 = vmatmul.mubr.f32.vlgmr.msra.gmra.mxu0 %v1780_v2 }
 0x8b5   :  { %v1874_v4 = vpop.f32.mrf.mxu0 }
 0x8b6   :  { %v1875_v20 = vadd.f32 %v1946_v46, %v1874_v4 }
 0x8b7   :  { %v2440_v63 = vpop.f32.mrf.mxu0 }
 0x8b8   :  { %1879 = vst.msk [vmem:[%s3950_s9] sm:$0xff] %vm1878_vm11, %v1875_v20  ;;  %v1947_v18 = vmul.f32 -1.442695, %v1875_v20 }
 0x8ba   :  { %2526 = vpow2.f32 %v1947_v18 }
 0x8c7   :  { %v2527_v14 = vpop.eup %2526 }
 0x8c8   :  { %v1883_v43 = vadd.f32 1.0, %v2527_v14 }
 0x8ca   :  { %2528 = vrcp.f32 %v1883_v43 }
 0x8d7   :  { %v2529_v37 = vpop.eup %2528 }
 0x8d8   :  { %1886 = vst.msk [vmem:[%s3951_s10] sm:$0xff] %vm1878_vm11, %v2529_v37 }

</bundles_post_ra>
